<compile_context>
chip_gen: v7x
topology: tpu7x:2x2x1
jax: 0.10.0
libtpu: 0.0.40
codegen_flags: <defaults>
</compile_context>

<pallas_src>
import functools

import jax
import jax.numpy as jnp
from jax.experimental import pallas as pl
from jax.experimental.pallas import tpu as pltpu

# ----------------------------- model config ---------------------------------
D_MODEL = 32
SEQ_LEN = 32
N_LAYERS = 2
DEPTH = 3
KERNEL_SIZE = 2
N_TOKENS = 16
D_OUTPUT = 10
BATCH = 2
LN_EPS = 1e-5


# ----------------------------- fused kernel ---------------------------------
def fused_multires_kernel(x_ref, pool_ref, small_ref, mix_ref, wbout_ref, o_ref, *,
                          n_layers, depth, kernel_size, seq_len, shifts):
    K = kernel_size
    x = x_ref[...]                                   # [B*L, D] activations (flat, f32)
    BL, D = x.shape

    # Causal keep-masks computed in-kernel from a row iota (no DMA operand): a row is
    # valid after a shift of s iff its position-within-sequence >= s.  Rows are laid
    # out sequence-contiguous, so pos = row mod L (bitwise AND when L is a power of 2).
    row = jax.lax.broadcasted_iota(jnp.int32, (BL, 1), 0)
    if (seq_len & (seq_len - 1)) == 0:
        tpos = jnp.bitwise_and(row, seq_len - 1)
    else:
        tpos = row % seq_len
    keep = {s: (tpos >= s).astype(jnp.float32) for s in shifts}

    def causal_shift(v, s):
        # out[b*L + t] = v[b*L + t - s] for t >= s else 0 ; s < L => no batch bleed.
        if s == 0:
            return v
        return pltpu.roll(v, s, axis=0) * keep[s]

    for li in range(n_layers):
        sm = small_ref[li]                           # [2K + depth + 4, D]
        woff = 2 * K                                 # w rows: woff .. woff + depth + 1
        # Taps are reused `depth` times inside the tree loop -> pre-broadcast once.
        h0b = [jnp.broadcast_to(sm[k:k + 1], (BL, D)) for k in range(K)]
        h1b = [jnp.broadcast_to(sm[K + k:K + k + 1], (BL, D)) for k in range(K)]
        gamma = sm[woff + depth + 2:woff + depth + 3]     # [1, D] (single use)
        beta = sm[woff + depth + 3:woff + depth + 4]      # [1, D] (single use)

        # ---- MultiresLayer forward (tree_select="fading") ----
        # w[:, -1] scales the direct x term, w[:, i] the level-i detail,
        # w[:, 0] the coarsest res_lo (same mapping as the reference MultiresLayer).
        res_lo = x
        y = x * sm[woff + depth + 1:woff + depth + 2]
        dilation = 1
        for i in range(depth, 0, -1):
            # Hoisted shared shifts: the h1 (detail) and h0 (smooth) depthwise convs
            # read the exact same shifted inputs -> compute each shift once per level.
            shifted = [causal_shift(res_lo, (K - 1 - k) * dilation)
                       for k in range(K - 1)]
            res_hi = res_lo * h1b[K - 1]
            new_lo = res_lo * h0b[K - 1]
            for k in range(K - 1):
                res_hi = res_hi + shifted[k] * h1b[k]
                new_lo = new_lo + shifted[k] * h0b[k]
            res_lo = new_lo
            y = y + res_hi * sm[woff + i:woff + i + 1]
            dilation *= 2
        y = y + res_lo * sm[woff:woff + 1]
        # (layer-internal Dropout1d -> identity in eval mode)

        # ---- mixing: Conv1d(D, 2D, 1) + GLU, as two lane-aligned half matmuls ----
        y16 = y.astype(jnp.bfloat16)                 # bf16 MXU operands, f32 accumulate
        mxv = mix_ref[li, 0]                         # [D + 1, D]  (value half: W ; b)
        mxg = mix_ref[li, 1]                         # [D + 1, D]  (gate  half: W ; b)
        zv = jnp.dot(y16, mxv[:D, :].astype(jnp.bfloat16),
                     preferred_element_type=jnp.float32) + mxv[D:D + 1, :]
        zg = jnp.dot(y16, mxg[:D, :].astype(jnp.bfloat16),
                     preferred_element_type=jnp.float32) + mxg[D:D + 1, :]
        z = zv * jax.nn.sigmoid(zg)
        # (Dropout1d -> identity in eval mode)

        # ---- residual + LayerNorm over channels (single-pass statistics) ----
        z = z + x
        inv_d = 1.0 / D
        mean = jnp.sum(z, axis=-1, keepdims=True) * inv_d
        msq = jnp.sum(z * z, axis=-1, keepdims=True) * inv_d
        var = jnp.maximum(msq - mean * mean, 0.0)    # guard f32 cancellation
        x = (z - mean) * jax.lax.rsqrt(var + LN_EPS) * gamma + beta

    # ---- masked mean-pool (block-diag matrix) + output Linear, both on the MXU ----
    pooled = jnp.dot(pool_ref[...].astype(jnp.bfloat16), x.astype(jnp.bfloat16),
                     preferred_element_type=jnp.float32)                    # [B, D]
    wb = wbout_ref[...]                                                     # [D+1, DO]
    out = jnp.dot(pooled.astype(jnp.bfloat16), wb[:D, :].astype(jnp.bfloat16),
                  preferred_element_type=jnp.float32) + wb[D:D + 1, :]
    o_ref[...] = out.astype(o_ref.dtype)


# ----------------------------- parameters -----------------------------------
def init_params(key):
    keys = jax.random.split(key, 3 + N_LAYERS)
    params = {
        "emb": 0.1 * jax.random.normal(keys[0], (N_TOKENS, D_MODEL), jnp.float32),
        "wout": 0.1 * jax.random.normal(keys[1], (D_MODEL, D_OUTPUT), jnp.float32),
        "bout": 0.01 * jax.random.normal(keys[2], (1, D_OUTPUT), jnp.float32),
        "layers": [],
    }
    for li in range(N_LAYERS):
        lk = jax.random.split(keys[3 + li], 6)
        params["layers"].append({
            # h0/h1: per-channel filter bank, stored [K, D] (torch: [D, 1, K])
            "h0": 0.5 * jax.random.normal(lk[0], (KERNEL_SIZE, D_MODEL), jnp.float32),
            "h1": 0.5 * jax.random.normal(lk[1], (KERNEL_SIZE, D_MODEL), jnp.float32),
            # w: per-channel mixing across tree levels, [depth + 2, D] (torch: [D, m+1])
            "w": 0.3 * jax.random.normal(lk[2], (DEPTH + 2, D_MODEL), jnp.float32),
            # mixing 1x1 conv: [D, 2D] weight (torch: [2D, D, 1]), bias [1, 2D]
            "mixw": 0.2 * jax.random.normal(lk[3], (D_MODEL, 2 * D_MODEL), jnp.float32),
            "mixb": 0.01 * jax.random.normal(lk[4], (1, 2 * D_MODEL), jnp.float32),
            # LayerNorm affine params (torch defaults: ones / zeros)
            "gamma": jnp.ones((1, D_MODEL), jnp.float32),
            "beta": jnp.zeros((1, D_MODEL), jnp.float32),
        })
    return params


# ----------------------------- forward ---------------------------------------
def multires_net_forward(x_5d, params):
    # torch: x = torch.squeeze(x.transpose(2, 4)) -> explicit axes so B/L==1 survive
    tok = jnp.squeeze(jnp.swapaxes(x_5d, 2, 4), axis=(1, 2, 3))      # [B, L] int tokens
    lengths = jnp.sum(tok != 0, axis=1)                              # [B] int32

    # nn.Embedding encoder (token gather kept in plain-JAX glue), channel-last.
    h = params["emb"][tok]                                           # [B, L, D]
    B, L, D = h.shape
    x_flat = h.reshape(B * L, D)

    # Distinct causal shift amounts used by the filter bank (static).
    K = KERNEL_SIZE
    shifts = tuple(sorted({(K - 1 - k) * (2 ** j)
                           for j in range(DEPTH) for k in range(K - 1)}))
    if shifts:   # roll+mask trick requires every shift < L (no cross-batch bleed)
        assert max(shifts) < L, "causal shift must be < seq_len for the roll+mask trick"

    # Masked mean-pool as a block-diagonal [B, B*L] matrix: mask / length.
    lengths_c = jnp.maximum(lengths, 1).astype(jnp.float32)          # guard length==0
    pos = jnp.arange(L, dtype=jnp.int32)[None, :]
    pool_w = (pos < lengths[:, None]).astype(jnp.float32) / lengths_c[:, None]   # [B, L]
    pool_mat = (jnp.eye(B, dtype=jnp.float32)[:, :, None] * pool_w[:, None, :]
                ).reshape(B, B * L)

    # Pack per-layer weights (few DMA descriptors).
    small_pack = jnp.stack([
        jnp.concatenate([lp["h0"], lp["h1"], lp["w"], lp["gamma"], lp["beta"]], axis=0)
        for lp in params["layers"]])                                 # [NL, 2K+depth+4, D]
    # Mixing weights packed per GLU half so both half-matmul outputs start at lane 0.
    mix_pack = jnp.stack([
        jnp.stack([
            jnp.concatenate([lp["mixw"][:, :D_MODEL], lp["mixb"][:, :D_MODEL]], axis=0),
            jnp.concatenate([lp["mixw"][:, D_MODEL:], lp["mixb"][:, D_MODEL:]], axis=0),
        ]) for lp in params["layers"]])                              # [NL, 2, D+1, D]
    # Output head weight + bias packed into one operand.
    wbout = jnp.concatenate([params["wout"], params["bout"]], axis=0)  # [D+1, D_OUT]

    kern = functools.partial(fused_multires_kernel, n_layers=N_LAYERS, depth=DEPTH,
                             kernel_size=K, seq_len=L, shifts=shifts)
    # Single fused grid-less pallas_call; all operands are KiB-scale and fully
    # VMEM-resident on every generation (v5e/v6e 128 MiB, v7x 64 MiB).
    return pl.pallas_call(
        kern,
        out_shape=jax.ShapeDtypeStruct((B, D_OUTPUT), jnp.float32),
    )(x_flat, pool_mat, small_pack, mix_pack, wbout)


# ----------------------------- pure-JAX reference -----------------------------
def _reference_forward(x_5d, params):
    tok = jnp.squeeze(jnp.swapaxes(x_5d, 2, 4), axis=(1, 2, 3))
    lengths = jnp.sum(tok != 0, axis=1)
    h = params["emb"][tok]                                           # [B, L, D]

    def shift(v, s):                                                 # causal time shift
        if s == 0:
            return v
        return jnp.pad(v, ((0, 0), (s, 0), (0, 0)))[:, :-s, :]

    for lp in params["layers"]:
        x0 = h
        res_lo, y, dil = h, h * lp["w"][DEPTH + 1][None, None, :], 1
        for i in range(DEPTH, 0, -1):
            def conv(v, taps):
                return sum(shift(v, (KERNEL_SIZE - 1 - k) * dil) * taps[k][None, None, :]
                           for k in range(KERNEL_SIZE))
            res_hi = conv(res_lo, lp["h1"])
            res_lo = conv(res_lo, lp["h0"])
            y = y + res_hi * lp["w"][i][None, None, :]
            dil *= 2
        y = y + res_lo * lp["w"][0][None, None, :]
        z = jnp.einsum("bld,de->ble", y, lp["mixw"]) + lp["mixb"]
        z = z[..., :D_MODEL] * jax.nn.sigmoid(z[..., D_MODEL:])
        z = z + x0
        mean = jnp.mean(z, axis=-1, keepdims=True)
        var = jnp.mean((z - mean) ** 2, axis=-1, keepdims=True)
        h = (z - mean) * jax.lax.rsqrt(var + LN_EPS) * lp["gamma"] + lp["beta"]
    mask = (jnp.arange(h.shape[1])[None, :] < lengths[:, None]).astype(h.dtype)
    pooled = jnp.sum(h * mask[:, :, None], axis=1) / jnp.maximum(lengths, 1)[:, None]
    return pooled @ params["wout"] + params["bout"]


# ----------------------------- main ------------------------------------------
if __name__ == "__main__":
    key = jax.random.PRNGKey(0)
    pkey, tkey = jax.random.split(key)
    params = init_params(pkey)

    # int token input, 5-D like the torch forward expects: [B, 1, L, 1, 1]
    tokens = jax.random.randint(tkey, (BATCH, SEQ_LEN), 1, N_TOKENS, dtype=jnp.int32)
    seq_lengths = jnp.array([SEQ_LEN, 20], dtype=jnp.int32)
    pos = jnp.arange(SEQ_LEN, dtype=jnp.int32)[None, :]
    tokens = jnp.where(pos < seq_lengths[:, None], tokens, 0)   # zero-pad tails
    x_5d = tokens[:, None, :, None, None]                       # [2, 1, 32, 1, 1]

    fwd = jax.jit(multires_net_forward)
    out = fwd(x_5d, params)
    jax.block_until_ready(out)

    assert out.shape == (BATCH, D_OUTPUT) and out.dtype == jnp.float32
    # Sanity-check against a pure-JAX f32 reference. Tolerance covers bf16 MXU
    # operands (estimated end-to-end error is a few e-3 at these magnitudes).
    ref = jax.jit(_reference_forward)(x_5d, params)
    assert jnp.allclose(out, ref, atol=3e-2, rtol=3e-2), "mismatch vs pure-JAX reference"
    print("KERNEL_OK")
</pallas_src>

<mosaic_0001>
module attributes {stable_mosaic.version = 11 : i64} {
  func.func @fused_multires_kernel(%arg0: memref<64x32xf32, #tpu.memory_space<vmem>>, %arg1: memref<2x64xf32, #tpu.memory_space<vmem>>, %arg2: memref<2x11x32xf32, #tpu.memory_space<vmem>>, %arg3: memref<2x2x33x32xf32, #tpu.memory_space<vmem>>, %arg4: memref<33x10xf32, #tpu.memory_space<vmem>>, %arg5: memref<2x10xf32, #tpu.memory_space<vmem>>) attributes {dimension_semantics = [], scalar_prefetch = 0 : i64, scratch_operands = 0 : i64, tpu.core_type = #tpu.core_type<tc>} {
    %c0 = arith.constant 0 : index
    %c0_0 = arith.constant 0 : index
    %0 = vector.load %arg0[%c0, %c0_0] : memref<64x32xf32, #tpu.memory_space<vmem>>, vector<64x32xf32>
    %1 = tpu.iota {dimensions = array<i32: 0>} : vector<64x1xi32>
    %c31_i32 = arith.constant 31 : i32
    %2 = vector.broadcast %c31_i32 : i32 to vector<64x1xi32>
    %3 = arith.andi %1, %2 : vector<64x1xi32>
    %c1_i32 = arith.constant 1 : i32
    %4 = vector.broadcast %c1_i32 : i32 to vector<64x1xi32>
    %5 = arith.cmpi sge, %3, %4 : vector<64x1xi32>
    %6 = arith.extui %5 : vector<64x1xi1> to vector<64x1xi32>
    %7 = arith.sitofp %6 : vector<64x1xi32> to vector<64x1xf32>
    %c2_i32 = arith.constant 2 : i32
    %8 = vector.broadcast %c2_i32 : i32 to vector<64x1xi32>
    %9 = arith.cmpi sge, %3, %8 : vector<64x1xi32>
    %10 = arith.extui %9 : vector<64x1xi1> to vector<64x1xi32>
    %11 = arith.sitofp %10 : vector<64x1xi32> to vector<64x1xf32>
    %c4_i32 = arith.constant 4 : i32
    %12 = vector.broadcast %c4_i32 : i32 to vector<64x1xi32>
    %13 = arith.cmpi sge, %3, %12 : vector<64x1xi32>
    %14 = arith.extui %13 : vector<64x1xi1> to vector<64x1xi32>
    %15 = arith.sitofp %14 : vector<64x1xi32> to vector<64x1xf32>
    %c0_1 = arith.constant 0 : index
    %c0_2 = arith.constant 0 : index
    %c0_3 = arith.constant 0 : index
    %16 = vector.load %arg2[%c0_1, %c0_2, %c0_3] : memref<2x11x32xf32, #tpu.memory_space<vmem>>, vector<1x11x32xf32>
    %17 = vector.shape_cast %16 : vector<1x11x32xf32> to vector<11x32xf32>
    %18 = vector.extract_strided_slice %17 {offsets = [0, 0], sizes = [1, 32], strides = [1, 1]} : vector<11x32xf32> to vector<1x32xf32>
    %19 = vector.shape_cast %18 : vector<1x32xf32> to vector<1x32xf32>
    %20 = vector.broadcast %19 : vector<1x32xf32> to vector<64x32xf32>
    %21 = vector.extract_strided_slice %17 {offsets = [1, 0], sizes = [1, 32], strides = [1, 1]} : vector<11x32xf32> to vector<1x32xf32>
    %22 = vector.shape_cast %21 : vector<1x32xf32> to vector<1x32xf32>
    %23 = vector.broadcast %22 : vector<1x32xf32> to vector<64x32xf32>
    %24 = vector.extract_strided_slice %17 {offsets = [2, 0], sizes = [1, 32], strides = [1, 1]} : vector<11x32xf32> to vector<1x32xf32>
    %25 = vector.shape_cast %24 : vector<1x32xf32> to vector<1x32xf32>
    %26 = vector.broadcast %25 : vector<1x32xf32> to vector<64x32xf32>
    %27 = vector.extract_strided_slice %17 {offsets = [3, 0], sizes = [1, 32], strides = [1, 1]} : vector<11x32xf32> to vector<1x32xf32>
    %28 = vector.shape_cast %27 : vector<1x32xf32> to vector<1x32xf32>
    %29 = vector.broadcast %28 : vector<1x32xf32> to vector<64x32xf32>
    %30 = vector.extract_strided_slice %17 {offsets = [9, 0], sizes = [1, 32], strides = [1, 1]} : vector<11x32xf32> to vector<1x32xf32>
    %31 = vector.extract_strided_slice %17 {offsets = [10, 0], sizes = [1, 32], strides = [1, 1]} : vector<11x32xf32> to vector<1x32xf32>
    %32 = vector.extract_strided_slice %17 {offsets = [8, 0], sizes = [1, 32], strides = [1, 1]} : vector<11x32xf32> to vector<1x32xf32>
    %33 = vector.broadcast %32 : vector<1x32xf32> to vector<64x32xf32>
    %34 = arith.mulf %0, %33 : vector<64x32xf32>
    %c1_i32_4 = arith.constant 1 : i32
    %35 = tpu.dynamic_rotate %0 by %c1_i32_4 dim 0 : vector<64x32xf32>, i32 -> vector<64x32xf32>
    %36 = vector.broadcast %7 : vector<64x1xf32> to vector<64x32xf32>
    %37 = arith.mulf %35, %36 : vector<64x32xf32>
    %38 = arith.mulf %0, %29 : vector<64x32xf32>
    %39 = arith.mulf %0, %23 : vector<64x32xf32>
    %40 = arith.mulf %37, %26 : vector<64x32xf32>
    %41 = arith.addf %38, %40 : vector<64x32xf32>
    %42 = arith.mulf %37, %20 : vector<64x32xf32>
    %43 = arith.addf %39, %42 : vector<64x32xf32>
    %44 = vector.extract_strided_slice %17 {offsets = [7, 0], sizes = [1, 32], strides = [1, 1]} : vector<11x32xf32> to vector<1x32xf32>
    %45 = vector.broadcast %44 : vector<1x32xf32> to vector<64x32xf32>
    %46 = arith.mulf %41, %45 : vector<64x32xf32>
    %47 = arith.addf %34, %46 : vector<64x32xf32>
    %c2_i32_5 = arith.constant 2 : i32
    %48 = tpu.dynamic_rotate %43 by %c2_i32_5 dim 0 : vector<64x32xf32>, i32 -> vector<64x32xf32>
    %49 = vector.broadcast %11 : vector<64x1xf32> to vector<64x32xf32>
    %50 = arith.mulf %48, %49 : vector<64x32xf32>
    %51 = arith.mulf %43, %29 : vector<64x32xf32>
    %52 = arith.mulf %43, %23 : vector<64x32xf32>
    %53 = arith.mulf %50, %26 : vector<64x32xf32>
    %54 = arith.addf %51, %53 : vector<64x32xf32>
    %55 = arith.mulf %50, %20 : vector<64x32xf32>
    %56 = arith.addf %52, %55 : vector<64x32xf32>
    %57 = vector.extract_strided_slice %17 {offsets = [6, 0], sizes = [1, 32], strides = [1, 1]} : vector<11x32xf32> to vector<1x32xf32>
    %58 = vector.broadcast %57 : vector<1x32xf32> to vector<64x32xf32>
    %59 = arith.mulf %54, %58 : vector<64x32xf32>
    %60 = arith.addf %47, %59 : vector<64x32xf32>
    %c4_i32_6 = arith.constant 4 : i32
    %61 = tpu.dynamic_rotate %56 by %c4_i32_6 dim 0 : vector<64x32xf32>, i32 -> vector<64x32xf32>
    %62 = vector.broadcast %15 : vector<64x1xf32> to vector<64x32xf32>
    %63 = arith.mulf %61, %62 : vector<64x32xf32>
    %64 = arith.mulf %56, %29 : vector<64x32xf32>
    %65 = arith.mulf %56, %23 : vector<64x32xf32>
    %66 = arith.mulf %63, %26 : vector<64x32xf32>
    %67 = arith.addf %64, %66 : vector<64x32xf32>
    %68 = arith.mulf %63, %20 : vector<64x32xf32>
    %69 = arith.addf %65, %68 : vector<64x32xf32>
    %70 = vector.extract_strided_slice %17 {offsets = [5, 0], sizes = [1, 32], strides = [1, 1]} : vector<11x32xf32> to vector<1x32xf32>
    %71 = vector.broadcast %70 : vector<1x32xf32> to vector<64x32xf32>
    %72 = arith.mulf %67, %71 : vector<64x32xf32>
    %73 = arith.addf %60, %72 : vector<64x32xf32>
    %74 = vector.extract_strided_slice %17 {offsets = [4, 0], sizes = [1, 32], strides = [1, 1]} : vector<11x32xf32> to vector<1x32xf32>
    %75 = vector.broadcast %74 : vector<1x32xf32> to vector<64x32xf32>
    %76 = arith.mulf %69, %75 : vector<64x32xf32>
    %77 = arith.addf %73, %76 : vector<64x32xf32>
    %78 = arith.truncf %77 : vector<64x32xf32> to vector<64x32xbf16>
    %c0_7 = arith.constant 0 : index
    %c0_8 = arith.constant 0 : index
    %c0_9 = arith.constant 0 : index
    %c0_10 = arith.constant 0 : index
    %79 = vector.load %arg3[%c0_7, %c0_8, %c0_9, %c0_10] : memref<2x2x33x32xf32, #tpu.memory_space<vmem>>, vector<1x1x33x32xf32>
    %80 = vector.shape_cast %79 : vector<1x1x33x32xf32> to vector<33x32xf32>
    %c0_11 = arith.constant 0 : index
    %c1 = arith.constant 1 : index
    %c0_12 = arith.constant 0 : index
    %c0_13 = arith.constant 0 : index
    %81 = vector.load %arg3[%c0_11, %c1, %c0_12, %c0_13] : memref<2x2x33x32xf32, #tpu.memory_space<vmem>>, vector<1x1x33x32xf32>
    %82 = vector.shape_cast %81 : vector<1x1x33x32xf32> to vector<33x32xf32>
    %83 = vector.extract_strided_slice %80 {offsets = [0, 0], sizes = [32, 32], strides = [1, 1]} : vector<33x32xf32> to vector<32x32xf32>
    %84 = arith.truncf %83 : vector<32x32xf32> to vector<32x32xbf16>
    %cst = arith.constant dense<0.000000e+00> : vector<64x32xf32>
    %85 = tpu.matmul %78, %84, %cst {dimension_numbers = #tpu.dot_dimension_numbers<[1], [0], [0], [1], [0, 0, 1, 1], [], []>} : vector<64x32xbf16>, vector<32x32xbf16>, vector<64x32xf32> -> vector<64x32xf32>
    %86 = vector.extract_strided_slice %80 {offsets = [32, 0], sizes = [1, 32], strides = [1, 1]} : vector<33x32xf32> to vector<1x32xf32>
    %87 = vector.broadcast %86 : vector<1x32xf32> to vector<64x32xf32>
    %88 = arith.addf %85, %87 : vector<64x32xf32>
    %89 = vector.extract_strided_slice %82 {offsets = [0, 0], sizes = [32, 32], strides = [1, 1]} : vector<33x32xf32> to vector<32x32xf32>
    %90 = arith.truncf %89 : vector<32x32xf32> to vector<32x32xbf16>
    %cst_14 = arith.constant dense<0.000000e+00> : vector<64x32xf32>
    %91 = tpu.matmul %78, %90, %cst_14 {dimension_numbers = #tpu.dot_dimension_numbers<[1], [0], [0], [1], [0, 0, 1, 1], [], []>} : vector<64x32xbf16>, vector<32x32xbf16>, vector<64x32xf32> -> vector<64x32xf32>
    %92 = vector.extract_strided_slice %82 {offsets = [32, 0], sizes = [1, 32], strides = [1, 1]} : vector<33x32xf32> to vector<1x32xf32>
    %93 = vector.broadcast %92 : vector<1x32xf32> to vector<64x32xf32>
    %94 = arith.addf %91, %93 : vector<64x32xf32>
    %95 = arith.negf %94 : vector<64x32xf32>
    %96 = math.exp %95 : vector<64x32xf32>
    %cst_15 = arith.constant 1.000000e+00 : f32
    %97 = vector.broadcast %cst_15 : f32 to vector<64x32xf32>
    %98 = arith.addf %97, %96 : vector<64x32xf32>
    %99 = arith.divf %97, %98 : vector<64x32xf32>
    %100 = arith.mulf %88, %99 : vector<64x32xf32>
    %101 = arith.addf %100, %0 : vector<64x32xf32>
    %cst_16 = arith.constant dense<0.000000e+00> : vector<64xf32>
    %102 = vector.multi_reduction <add>, %101, %cst_16 [1] : vector<64x32xf32> to vector<64xf32>
    %103 = vector.shape_cast %102 : vector<64xf32> to vector<64x1xf32>
    %cst_17 = arith.constant 3.125000e-02 : f32
    %104 = vector.broadcast %cst_17 : f32 to vector<64x1xf32>
    %105 = arith.mulf %103, %104 : vector<64x1xf32>
    %106 = arith.mulf %101, %101 : vector<64x32xf32>
    %cst_18 = arith.constant dense<0.000000e+00> : vector<64xf32>
    %107 = vector.multi_reduction <add>, %106, %cst_18 [1] : vector<64x32xf32> to vector<64xf32>
    %108 = vector.shape_cast %107 : vector<64xf32> to vector<64x1xf32>
    %cst_19 = arith.constant 3.125000e-02 : f32
    %109 = vector.broadcast %cst_19 : f32 to vector<64x1xf32>
    %110 = arith.mulf %108, %109 : vector<64x1xf32>
    %111 = arith.mulf %105, %105 : vector<64x1xf32>
    %112 = arith.subf %110, %111 : vector<64x1xf32>
    %cst_20 = arith.constant 0.000000e+00 : f32
    %113 = vector.broadcast %cst_20 : f32 to vector<64x1xf32>
    %114 = arith.maximumf %112, %113 : vector<64x1xf32>
    %115 = vector.broadcast %105 : vector<64x1xf32> to vector<64x32xf32>
    %116 = arith.subf %101, %115 : vector<64x32xf32>
    %cst_21 = arith.constant 9.99999974E-6 : f32
    %117 = vector.broadcast %cst_21 : f32 to vector<64x1xf32>
    %118 = arith.addf %114, %117 : vector<64x1xf32>
    %119 = math.rsqrt %118 : vector<64x1xf32>
    %120 = vector.broadcast %119 : vector<64x1xf32> to vector<64x32xf32>
    %121 = arith.mulf %116, %120 : vector<64x32xf32>
    %122 = vector.broadcast %30 : vector<1x32xf32> to vector<64x32xf32>
    %123 = arith.mulf %121, %122 : vector<64x32xf32>
    %124 = vector.broadcast %31 : vector<1x32xf32> to vector<64x32xf32>
    %125 = arith.addf %123, %124 : vector<64x32xf32>
    %c1_22 = arith.constant 1 : index
    %c0_23 = arith.constant 0 : index
    %c0_24 = arith.constant 0 : index
    %126 = vector.load %arg2[%c1_22, %c0_23, %c0_24] : memref<2x11x32xf32, #tpu.memory_space<vmem>>, vector<1x11x32xf32>
    %127 = vector.shape_cast %126 : vector<1x11x32xf32> to vector<11x32xf32>
    %128 = vector.extract_strided_slice %127 {offsets = [0, 0], sizes = [1, 32], strides = [1, 1]} : vector<11x32xf32> to vector<1x32xf32>
    %129 = vector.shape_cast %128 : vector<1x32xf32> to vector<1x32xf32>
    %130 = vector.broadcast %129 : vector<1x32xf32> to vector<64x32xf32>
    %131 = vector.extract_strided_slice %127 {offsets = [1, 0], sizes = [1, 32], strides = [1, 1]} : vector<11x32xf32> to vector<1x32xf32>
    %132 = vector.shape_cast %131 : vector<1x32xf32> to vector<1x32xf32>
    %133 = vector.broadcast %132 : vector<1x32xf32> to vector<64x32xf32>
    %134 = vector.extract_strided_slice %127 {offsets = [2, 0], sizes = [1, 32], strides = [1, 1]} : vector<11x32xf32> to vector<1x32xf32>
    %135 = vector.shape_cast %134 : vector<1x32xf32> to vector<1x32xf32>
    %136 = vector.broadcast %135 : vector<1x32xf32> to vector<64x32xf32>
    %137 = vector.extract_strided_slice %127 {offsets = [3, 0], sizes = [1, 32], strides = [1, 1]} : vector<11x32xf32> to vector<1x32xf32>
    %138 = vector.shape_cast %137 : vector<1x32xf32> to vector<1x32xf32>
    %139 = vector.broadcast %138 : vector<1x32xf32> to vector<64x32xf32>
    %140 = vector.extract_strided_slice %127 {offsets = [9, 0], sizes = [1, 32], strides = [1, 1]} : vector<11x32xf32> to vector<1x32xf32>
    %141 = vector.extract_strided_slice %127 {offsets = [10, 0], sizes = [1, 32], strides = [1, 1]} : vector<11x32xf32> to vector<1x32xf32>
    %142 = vector.extract_strided_slice %127 {offsets = [8, 0], sizes = [1, 32], strides = [1, 1]} : vector<11x32xf32> to vector<1x32xf32>
    %143 = vector.broadcast %142 : vector<1x32xf32> to vector<64x32xf32>
    %144 = arith.mulf %125, %143 : vector<64x32xf32>
    %c1_i32_25 = arith.constant 1 : i32
    %145 = tpu.dynamic_rotate %125 by %c1_i32_25 dim 0 : vector<64x32xf32>, i32 -> vector<64x32xf32>
    %146 = vector.broadcast %7 : vector<64x1xf32> to vector<64x32xf32>
    %147 = arith.mulf %145, %146 : vector<64x32xf32>
    %148 = arith.mulf %125, %139 : vector<64x32xf32>
    %149 = arith.mulf %125, %133 : vector<64x32xf32>
    %150 = arith.mulf %147, %136 : vector<64x32xf32>
    %151 = arith.addf %148, %150 : vector<64x32xf32>
    %152 = arith.mulf %147, %130 : vector<64x32xf32>
    %153 = arith.addf %149, %152 : vector<64x32xf32>
    %154 = vector.extract_strided_slice %127 {offsets = [7, 0], sizes = [1, 32], strides = [1, 1]} : vector<11x32xf32> to vector<1x32xf32>
    %155 = vector.broadcast %154 : vector<1x32xf32> to vector<64x32xf32>
    %156 = arith.mulf %151, %155 : vector<64x32xf32>
    %157 = arith.addf %144, %156 : vector<64x32xf32>
    %c2_i32_26 = arith.constant 2 : i32
    %158 = tpu.dynamic_rotate %153 by %c2_i32_26 dim 0 : vector<64x32xf32>, i32 -> vector<64x32xf32>
    %159 = vector.broadcast %11 : vector<64x1xf32> to vector<64x32xf32>
    %160 = arith.mulf %158, %159 : vector<64x32xf32>
    %161 = arith.mulf %153, %139 : vector<64x32xf32>
    %162 = arith.mulf %153, %133 : vector<64x32xf32>
    %163 = arith.mulf %160, %136 : vector<64x32xf32>
    %164 = arith.addf %161, %163 : vector<64x32xf32>
    %165 = arith.mulf %160, %130 : vector<64x32xf32>
    %166 = arith.addf %162, %165 : vector<64x32xf32>
    %167 = vector.extract_strided_slice %127 {offsets = [6, 0], sizes = [1, 32], strides = [1, 1]} : vector<11x32xf32> to vector<1x32xf32>
    %168 = vector.broadcast %167 : vector<1x32xf32> to vector<64x32xf32>
    %169 = arith.mulf %164, %168 : vector<64x32xf32>
    %170 = arith.addf %157, %169 : vector<64x32xf32>
    %c4_i32_27 = arith.constant 4 : i32
    %171 = tpu.dynamic_rotate %166 by %c4_i32_27 dim 0 : vector<64x32xf32>, i32 -> vector<64x32xf32>
    %172 = vector.broadcast %15 : vector<64x1xf32> to vector<64x32xf32>
    %173 = arith.mulf %171, %172 : vector<64x32xf32>
    %174 = arith.mulf %166, %139 : vector<64x32xf32>
    %175 = arith.mulf %166, %133 : vector<64x32xf32>
    %176 = arith.mulf %173, %136 : vector<64x32xf32>
    %177 = arith.addf %174, %176 : vector<64x32xf32>
    %178 = arith.mulf %173, %130 : vector<64x32xf32>
    %179 = arith.addf %175, %178 : vector<64x32xf32>
    %180 = vector.extract_strided_slice %127 {offsets = [5, 0], sizes = [1, 32], strides = [1, 1]} : vector<11x32xf32> to vector<1x32xf32>
    %181 = vector.broadcast %180 : vector<1x32xf32> to vector<64x32xf32>
    %182 = arith.mulf %177, %181 : vector<64x32xf32>
    %183 = arith.addf %170, %182 : vector<64x32xf32>
    %184 = vector.extract_strided_slice %127 {offsets = [4, 0], sizes = [1, 32], strides = [1, 1]} : vector<11x32xf32> to vector<1x32xf32>
    %185 = vector.broadcast %184 : vector<1x32xf32> to vector<64x32xf32>
    %186 = arith.mulf %179, %185 : vector<64x32xf32>
    %187 = arith.addf %183, %186 : vector<64x32xf32>
    %188 = arith.truncf %187 : vector<64x32xf32> to vector<64x32xbf16>
    %c1_28 = arith.constant 1 : index
    %c0_29 = arith.constant 0 : index
    %c0_30 = arith.constant 0 : index
    %c0_31 = arith.constant 0 : index
    %189 = vector.load %arg3[%c1_28, %c0_29, %c0_30, %c0_31] : memref<2x2x33x32xf32, #tpu.memory_space<vmem>>, vector<1x1x33x32xf32>
    %190 = vector.shape_cast %189 : vector<1x1x33x32xf32> to vector<33x32xf32>
    %c1_32 = arith.constant 1 : index
    %c1_33 = arith.constant 1 : index
    %c0_34 = arith.constant 0 : index
    %c0_35 = arith.constant 0 : index
    %191 = vector.load %arg3[%c1_32, %c1_33, %c0_34, %c0_35] : memref<2x2x33x32xf32, #tpu.memory_space<vmem>>, vector<1x1x33x32xf32>
    %192 = vector.shape_cast %191 : vector<1x1x33x32xf32> to vector<33x32xf32>
    %193 = vector.extract_strided_slice %190 {offsets = [0, 0], sizes = [32, 32], strides = [1, 1]} : vector<33x32xf32> to vector<32x32xf32>
    %194 = arith.truncf %193 : vector<32x32xf32> to vector<32x32xbf16>
    %cst_36 = arith.constant dense<0.000000e+00> : vector<64x32xf32>
    %195 = tpu.matmul %188, %194, %cst_36 {dimension_numbers = #tpu.dot_dimension_numbers<[1], [0], [0], [1], [0, 0, 1, 1], [], []>} : vector<64x32xbf16>, vector<32x32xbf16>, vector<64x32xf32> -> vector<64x32xf32>
    %196 = vector.extract_strided_slice %190 {offsets = [32, 0], sizes = [1, 32], strides = [1, 1]} : vector<33x32xf32> to vector<1x32xf32>
    %197 = vector.broadcast %196 : vector<1x32xf32> to vector<64x32xf32>
    %198 = arith.addf %195, %197 : vector<64x32xf32>
    %199 = vector.extract_strided_slice %192 {offsets = [0, 0], sizes = [32, 32], strides = [1, 1]} : vector<33x32xf32> to vector<32x32xf32>
    %200 = arith.truncf %199 : vector<32x32xf32> to vector<32x32xbf16>
    %cst_37 = arith.constant dense<0.000000e+00> : vector<64x32xf32>
    %201 = tpu.matmul %188, %200, %cst_37 {dimension_numbers = #tpu.dot_dimension_numbers<[1], [0], [0], [1], [0, 0, 1, 1], [], []>} : vector<64x32xbf16>, vector<32x32xbf16>, vector<64x32xf32> -> vector<64x32xf32>
    %202 = vector.extract_strided_slice %192 {offsets = [32, 0], sizes = [1, 32], strides = [1, 1]} : vector<33x32xf32> to vector<1x32xf32>
    %203 = vector.broadcast %202 : vector<1x32xf32> to vector<64x32xf32>
    %204 = arith.addf %201, %203 : vector<64x32xf32>
    %205 = arith.negf %204 : vector<64x32xf32>
    %206 = math.exp %205 : vector<64x32xf32>
    %cst_38 = arith.constant 1.000000e+00 : f32
    %207 = vector.broadcast %cst_38 : f32 to vector<64x32xf32>
    %208 = arith.addf %207, %206 : vector<64x32xf32>
    %209 = arith.divf %207, %208 : vector<64x32xf32>
    %210 = arith.mulf %198, %209 : vector<64x32xf32>
    %211 = arith.addf %210, %125 : vector<64x32xf32>
    %cst_39 = arith.constant dense<0.000000e+00> : vector<64xf32>
    %212 = vector.multi_reduction <add>, %211, %cst_39 [1] : vector<64x32xf32> to vector<64xf32>
    %213 = vector.shape_cast %212 : vector<64xf32> to vector<64x1xf32>
    %cst_40 = arith.constant 3.125000e-02 : f32
    %214 = vector.broadcast %cst_40 : f32 to vector<64x1xf32>
    %215 = arith.mulf %213, %214 : vector<64x1xf32>
    %216 = arith.mulf %211, %211 : vector<64x32xf32>
    %cst_41 = arith.constant dense<0.000000e+00> : vector<64xf32>
    %217 = vector.multi_reduction <add>, %216, %cst_41 [1] : vector<64x32xf32> to vector<64xf32>
    %218 = vector.shape_cast %217 : vector<64xf32> to vector<64x1xf32>
    %cst_42 = arith.constant 3.125000e-02 : f32
    %219 = vector.broadcast %cst_42 : f32 to vector<64x1xf32>
    %220 = arith.mulf %218, %219 : vector<64x1xf32>
    %221 = arith.mulf %215, %215 : vector<64x1xf32>
    %222 = arith.subf %220, %221 : vector<64x1xf32>
    %cst_43 = arith.constant 0.000000e+00 : f32
    %223 = vector.broadcast %cst_43 : f32 to vector<64x1xf32>
    %224 = arith.maximumf %222, %223 : vector<64x1xf32>
    %225 = vector.broadcast %215 : vector<64x1xf32> to vector<64x32xf32>
    %226 = arith.subf %211, %225 : vector<64x32xf32>
    %cst_44 = arith.constant 9.99999974E-6 : f32
    %227 = vector.broadcast %cst_44 : f32 to vector<64x1xf32>
    %228 = arith.addf %224, %227 : vector<64x1xf32>
    %229 = math.rsqrt %228 : vector<64x1xf32>
    %230 = vector.broadcast %229 : vector<64x1xf32> to vector<64x32xf32>
    %231 = arith.mulf %226, %230 : vector<64x32xf32>
    %232 = vector.broadcast %140 : vector<1x32xf32> to vector<64x32xf32>
    %233 = arith.mulf %231, %232 : vector<64x32xf32>
    %234 = vector.broadcast %141 : vector<1x32xf32> to vector<64x32xf32>
    %235 = arith.addf %233, %234 : vector<64x32xf32>
    %c0_45 = arith.constant 0 : index
    %c0_46 = arith.constant 0 : index
    %236 = vector.load %arg1[%c0_45, %c0_46] : memref<2x64xf32, #tpu.memory_space<vmem>>, vector<2x64xf32>
    %237 = arith.truncf %236 : vector<2x64xf32> to vector<2x64xbf16>
    %238 = arith.truncf %235 : vector<64x32xf32> to vector<64x32xbf16>
    %cst_47 = arith.constant dense<0.000000e+00> : vector<2x32xf32>
    %239 = tpu.matmul %237, %238, %cst_47 {dimension_numbers = #tpu.dot_dimension_numbers<[1], [0], [0], [1], [0, 0, 1, 1], [], []>} : vector<2x64xbf16>, vector<64x32xbf16>, vector<2x32xf32> -> vector<2x32xf32>
    %c0_48 = arith.constant 0 : index
    %c0_49 = arith.constant 0 : index
    %240 = vector.load %arg4[%c0_48, %c0_49] : memref<33x10xf32, #tpu.memory_space<vmem>>, vector<33x10xf32>
    %241 = arith.truncf %239 : vector<2x32xf32> to vector<2x32xbf16>
    %242 = vector.extract_strided_slice %240 {offsets = [0, 0], sizes = [32, 10], strides = [1, 1]} : vector<33x10xf32> to vector<32x10xf32>
    %243 = arith.truncf %242 : vector<32x10xf32> to vector<32x10xbf16>
    %cst_50 = arith.constant dense<0.000000e+00> : vector<2x10xf32>
    %244 = tpu.matmul %241, %243, %cst_50 {dimension_numbers = #tpu.dot_dimension_numbers<[1], [0], [0], [1], [0, 0, 1, 1], [], []>} : vector<2x32xbf16>, vector<32x10xbf16>, vector<2x10xf32> -> vector<2x10xf32>
    %245 = vector.extract_strided_slice %240 {offsets = [32, 0], sizes = [1, 10], strides = [1, 1]} : vector<33x10xf32> to vector<1x10xf32>
    %246 = vector.broadcast %245 : vector<1x10xf32> to vector<2x10xf32>
    %247 = arith.addf %244, %246 : vector<2x10xf32>
    %c0_51 = arith.constant 0 : index
    %c0_52 = arith.constant 0 : index
    %248 = vector.load %arg5[%c0_51, %c0_52] : memref<2x10xf32, #tpu.memory_space<vmem>>, vector<2x10xf32>
    tpu.vector_store %arg5[%c0_51, %c0_52], %247 {strides = array<i32>} : memref<2x10xf32, #tpu.memory_space<vmem>>, vector<2x10xf32>,
    return
  }
}

</mosaic_0001>

<bundles_post_ra>
// kernel: multires_net_forward.1
= control target key start
LH: loop header
LB: loop body
LE: loop exit
PB: predicated region body
PF: predicated region fallthrough
CT: control target
= control target key end

     0   :  { %v30_v3 = vlaneseq  ;;  %v3248_v24 = vmov 0.0   ;;  %s3233_s0 = inlined_call_operand.vmem [shape: f32[64,32], index: 0, kind: input, shape index: {}]   ;;  %s3234_s1 = inlined_call_operand.vmem [shape: f32[2,64], index: 1, kind: input, shape index: {}]   ;;  %s3235_s2 = inlined_call_operand.vmem [shape: f32[2,11,32], index: 2, kind: input, shape index: {}]   ;;  %s3236_s3 = inlined_call_operand.vmem [shape: f32[2,2,33,32], index: 3, kind: input, shape index: {}]   ;;  %s3237_s4 = inlined_call_operand.vmem [shape: f32[33,10], index: 4, kind: input, shape index: {}]   ;;  %s3238_s5 = inlined_call_operand.hbm [shape: f32[2,10], index: 5, kind: output, shape index: {}]  }
   0x1   :  { %v1674_v0 = vld [vmem:[%s3236_s3 + $0x28] sm:$0xff]  ;;  %v1675_v1 = vld [vmem:[%s3236_s3 + $0x30] sm:$0xff]  ;;  %v1676_v2 = vld [vmem:[%s3236_s3 + $0x38] sm:$0xff] }
   0x2   :  { %v547_v4 = vpack.c.bf16 %v1675_v1, %v1674_v0  ;;  %v1677_v5 = vld [vmem:[%s3236_s3 + $0x40] sm:$0xff]  ;;  %v2007_v8 = vld [vmem:[%s3233_s0 + $0x8] sm:$0xff]  ;;  %v2012_v9 = vld [vmem:[%s3233_s0 + $0x38] sm:$0xff]  ;;  %v2014_v10 = vshrl.u32 %v30_v3, 7 }
   0x3   :  { %v2002_v6 = vld [vmem:[%s3233_s0] sm:$0xff]  ;;  %v548_v7 = vpack.c.bf16 %v1677_v5, %v1676_v2  ;;  %v2019_v11 = vld [vmem:[%s3233_s0 + $0x28] sm:$0xff]  ;;  %v2024_v12 = vld [vmem:[%s3233_s0 + $0x30] sm:$0xff]  ;;  %v150_v20 = vrot.slane %v2007_v8, 7  ;;  %v156_v21 = vrot.slane %v2012_v9, 7 }
   0x4   :  { %1774 = vmatprep.subr.bf16.mxu1 %v547_v4  ;;  %v2027_v13 = vand.u32 31, %v2014_v10  ;;  %v2032_v14 = vld [vmem:[%s3235_s2] sm:$0xff]  ;;  %v2035_v15 = vsub.s32 0, %v2014_v10  ;;  %v2038_v16 = vsub.s32 1, %v2014_v10  ;;  %v149_v17 = vrot.slane %v2002_v6, 7 }
   0x5   :  { %1775 = vmatpush3.bf16.msra.mxu1 %v547_v4  ;;  %v2042_v18 = vsub.s32 2, %v2014_v10  ;;  %v3243_v19 = vsub.s32 3, %v2014_v10  ;;  %v154_v22 = vrot.slane %v2019_v11, 7  ;;  %v155_v23 = vrot.slane %v2024_v12, 7 }
   0x6   :  { %3262 = vst [vmem:[#allocation5_spill] sm:$0xff] %v2038_v16  ;;  %1776 = vmatprep.subr.bf16.mxu1 %v548_v7  ;;  %vm47_vm0 = vcmp.ge.s32.totalorder %v2027_v13, 1  ;;  %vm157_vm1 = vcmp.lt.s32.totalorder %v2014_v10, 1  ;;  %v2056_v26 = vrot.slane %v2032_v14, %v2038_v16 }
   0x7   :  { %3263 = vst [vmem:[#allocation6_spill] sm:$0xff] %v2042_v18  ;;  %v2052_v25 = vsel %vm47_vm0, 1.0, %v3248_v24 }
   0x8   :  { %10 = vsyncpa [#allocation3], 0  ;;  %v2061_v27 = vld [vmem:[%s3235_s2 + $0x8] sm:$0x7]  ;;  %v2065_v28 = vrot.slane %v2032_v14, %v2035_v15  ;;  %v2070_v29 = vrot.slane %v2032_v14, %v3243_v19  ;;  %v3242_v30 = vsub.s32 7, %v2014_v10  ;;  %vm71_vm2 = vcmp.ge.s32.totalorder %v2027_v13, 2 }
   0x9   :  { %1777 = vmatpush3.bf16.msra.mxu1 %v548_v7  ;;  %v2076_v31 = vrot.slane %v2032_v14, %v2042_v18  ;;  %v164_v32 = vsel %vm157_vm1, %v149_v17, %v150_v20  ;;  %v165_v33 = vsel %vm157_vm1, %v156_v21, %v149_v17  ;;  %v2086_v34 = vsel %vm157_vm1, %v155_v23, %v156_v21  ;;  %s1956_s17 = smov [#allocation2]  }
   0xa   :  { %v2092_v35 = vsel %vm157_vm1, %v154_v22, %v155_v23  ;;  %v166_v36 = vmul.f32 %v2052_v25, %v165_v33  ;;  %v182_v37 = vmul.f32 %v2056_v26, %v2002_v6  ;;  %v2099_v38 = vrot.slane %v2061_v27, %v2035_v15 }
   0xb   :  { %v183_v39 = vmul.f32 %v2056_v26, %v2007_v8  ;;  %v188_v40 = vmul.f32 %v2056_v26, %v2024_v12  ;;  %v189_v41 = vmul.f32 %v2056_v26, %v2012_v9  ;;  %v174_v42 = vmul.f32 %v2070_v29, %v2002_v6 }
   0xc   :  { %v175_v43 = vmul.f32 %v2070_v29, %v2007_v8  ;;  %v206_v44 = vmul.f32 %v166_v36, %v2065_v28  ;;  %v207_v45 = vmul.f32 %v164_v32, %v2065_v28  ;;  %v190_v46 = vmul.f32 %v166_v36, %v2076_v31 }
   0xd   :  { %v191_v47 = vmul.f32 %v164_v32, %v2076_v31  ;;  %v212_v48 = vmul.f32 %v2092_v35, %v2065_v28  ;;  %v213_v49 = vmul.f32 %v2086_v34, %v2065_v28  ;;  %vm95_vm3 = vcmp.ge.s32.totalorder %v2027_v13, 4 }
   0xe   :  { %v214_v50 = vadd.f32 %v206_v44, %v182_v37  ;;  %v2120_v51 = vadd.f32 %v207_v45, %v183_v39  ;;  %vm250_vm4 = vcmp.lt.s32.totalorder %v2014_v10, 2  ;;  %v2126_v52 = vsel %vm71_vm2, 1.0, %v3248_v24 }
   0xf   :  { %v141_v53 = vmul.f32 %v2099_v38, %v2002_v6  ;;  %v2130_v54 = vadd.f32 %v212_v48, %v188_v40  ;;  %v2132_v55 = vadd.f32 %v213_v49, %v189_v41  ;;  %v2137_v56 = vrot.slane %v2032_v14, %v3242_v30 }
  0x10   :  { %v242_v57 = vrot.slane %v214_v50, 6  ;;  %v243_v58 = vrot.slane %v2120_v51, 6  ;;  %v3241_v59 = vsub.s32 6, %v2014_v10  ;;  %v198_v60 = vadd.f32 %v190_v46, %v174_v42 }
  0x11   :  { %v199_v61 = vadd.f32 %v191_v47, %v175_v43  ;;  %v3245_v62 = vrot.slane %v2130_v54, 6  ;;  %v249_v63 = vrot.slane %v2132_v55, 6  ;;  %v267_v1 = vmul.f32 %v214_v50, %v2070_v29 }
  0x12   :  { %v257_v0 = vsel %vm250_vm4, %v242_v57, %v243_v58  ;;  %v268_v2 = vmul.f32 %v2120_v51, %v2070_v29  ;;  %v275_v3 = vmul.f32 %v214_v50, %v2056_v26  ;;  %v276_v7 = vmul.f32 %v2120_v51, %v2056_v26 }
  0x13   :  { %v2155_v4 = vsel %vm250_vm4, %v3245_v62, %v249_v63  ;;  %v258_v5 = vsel %vm250_vm4, %v249_v63, %v242_v57  ;;  %v282_v17 = vmul.f32 %v2132_v55, %v2056_v26  ;;  %v284_v23 = vmul.f32 %v257_v0, %v2076_v31 }
  0x14   :  { %v259_v21 = vmul.f32 %v2126_v52, %v258_v5  ;;  %v300_v32 = vmul.f32 %v257_v0, %v2065_v28  ;;  %v306_v33 = vmul.f32 %v2155_v4, %v2065_v28  ;;  %v142_v36 = vmul.f32 %v2099_v38, %v2007_v8 }
  0x15   :  { %v226_v37 = vmul.f32 %v2137_v56, %v198_v60  ;;  %v227_v39 = vmul.f32 %v2137_v56, %v199_v61  ;;  %v2175_v40 = vrot.slane %v2032_v14, %v3241_v59  ;;  %v292_v42 = vadd.f32 %v284_v23, %v268_v2 }
  0x16   :  { %v283_v41 = vmul.f32 %v259_v21, %v2076_v31  ;;  %v299_v43 = vmul.f32 %v259_v21, %v2065_v28  ;;  %v2179_v44 = vadd.f32 %v300_v32, %v276_v7  ;;  %v2181_v45 = vadd.f32 %v306_v33, %v282_v17 }
  0x17   :  { %v3240_v46 = vsub.s32 5, %v2014_v10  ;;  %v3239_v50 = vsub.s32 4, %v2014_v10  ;;  %v2189_v57 = vsel %vm95_vm3, 1.0, %v3248_v24  ;;  %v234_v60 = vadd.f32 %v226_v37, %v141_v53  ;;  %v2207_v53 = vld [vmem:[%s3233_s0 + $0x10] sm:$0xff] }
  0x18   :  { %v291_v47 = vadd.f32 %v283_v41, %v267_v1  ;;  %v307_v48 = vadd.f32 %v299_v43, %v275_v3  ;;  %v336_v49 = vrot.slane %v2179_v44, 4  ;;  %v3244_v61 = vrot.slane %v2181_v45, 4 }
  0x19   :  { %vm343_vm5 = vcmp.lt.s32.totalorder %v2014_v10, 4  ;;  %v235_v63 = vadd.f32 %v227_v39, %v142_v36  ;;  %v320_v1 = vmul.f32 %v2175_v40, %v292_v42  ;;  %v361_v3 = vmul.f32 %v2179_v44, %v2070_v29  ;;  %v2230_v39 = vld [vmem:[%s3233_s0 + $0x18] sm:$0xff] }
  0x1a   :  { %v319_v0 = vmul.f32 %v2175_v40, %v291_v47  ;;  %v335_v2 = vrot.slane %v307_v48, 4  ;;  %v369_v5 = vmul.f32 %v2179_v44, %v2056_v26  ;;  %v2202_v13 = vrot.slane %v2032_v14, %v3240_v46 }
  0x1b   :  { %v360_v21 = vmul.f32 %v307_v48, %v2070_v29  ;;  %v2221_v23 = vrot.slane %v2032_v14, %v3239_v50  ;;  %v368_v33 = vmul.f32 %v307_v48, %v2056_v26  ;;  %v328_v42 = vadd.f32 %v320_v1, %v235_v63 }
  0x1c   :  { %v350_v7 = vsel %vm343_vm5, %v335_v2, %v336_v49  ;;  %v351_v17 = vsel %vm343_vm5, %v3244_v61, %v335_v2  ;;  %v327_v41 = vadd.f32 %v319_v0, %v234_v60  ;;  %v151_v43 = vrot.slane %v2207_v53, 7 }
  0x1d   :  { %v352_v32 = vmul.f32 %v2189_v57, %v351_v17  ;;  %v377_v36 = vmul.f32 %v350_v7, %v2076_v31  ;;  %v393_v37 = vmul.f32 %v350_v7, %v2065_v28  ;;  %v152_v48 = vrot.slane %v2230_v39, 7 }
  0x1e   :  { %v163_v7 = vsel %vm157_vm1, %v150_v20, %v151_v43  ;;  %v176_v50 = vmul.f32 %v2070_v29, %v2207_v53  ;;  %v177_v60 = vmul.f32 %v2070_v29, %v2230_v39  ;;  %v184_v20 = vmul.f32 %v2056_v26, %v2207_v53 }
  0x1f   :  { %v376_v14 = vmul.f32 %v352_v32, %v2076_v31  ;;  %v385_v47 = vadd.f32 %v377_v36, %v361_v3  ;;  %v392_v2 = vmul.f32 %v352_v32, %v2065_v28  ;;  %v401_v17 = vadd.f32 %v393_v37, %v369_v5 }
  0x20   :  { %v162_v5 = vsel %vm157_vm1, %v151_v43, %v152_v48  ;;  %v185_v32 = vmul.f32 %v2056_v26, %v2230_v39  ;;  %v192_v36 = vmul.f32 %v163_v7, %v2076_v31  ;;  %vm469_vm6 = vcmask 261120  }
  0x21   :  { %v384_v63 = vadd.f32 %v376_v14, %v360_v21  ;;  %v400_v0 = vadd.f32 %v392_v2, %v368_v33  ;;  %v413_v1 = vmul.f32 %v2202_v13, %v385_v47  ;;  %v433_v3 = vmul.f32 %v2221_v23, %v401_v17 }
  0x22   :  { %v193_v14 = vmul.f32 %v162_v5, %v2076_v31  ;;  %v200_v47 = vadd.f32 %v192_v36, %v176_v50  ;;  %v208_v2 = vmul.f32 %v163_v7, %v2065_v28  ;;  %v209_v43 = vmul.f32 %v162_v5, %v2065_v28 }
  0x23   :  { %v412_v21 = vmul.f32 %v2202_v13, %v384_v63  ;;  %v421_v33 = vadd.f32 %v413_v1, %v328_v42  ;;  %v432_v37 = vmul.f32 %v2221_v23, %v400_v0  ;;  %v35_v17 = vadd.s32 32, %v2014_v10  ;;  %v2264_v63 = vld [vmem:[%s3233_s0 + $0x20] sm:$0xff] }
  0x24   :  { %v201_v30 = vadd.f32 %v193_v14, %v177_v60  ;;  %v143_v42 = vmul.f32 %v2099_v38, %v2207_v53  ;;  %v216_v0 = vadd.f32 %v208_v2, %v184_v20  ;;  %v2268_v50 = vadd.f32 %v209_v43, %v185_v32 }
  0x25   :  { %v420_v46 = vadd.f32 %v412_v21, %v327_v41  ;;  %v441_v59 = vadd.f32 %v433_v3, %v421_v33  ;;  %v2270_v7 = vand.u32 31, %v35_v17  ;;  %v144_v41 = vmul.f32 %v2099_v38, %v2230_v39 }
  0x26   :  { %v228_v3 = vmul.f32 %v2137_v56, %v200_v47  ;;  %v2277_v60 = vmul.f32 %v2099_v38, %v2264_v63  ;;  %v229_v5 = vmul.f32 %v2137_v56, %v201_v30  ;;  %v244_v36 = vrot.slane %v216_v0, 6 }
  0x27   :  { %v440_v1 = vadd.f32 %v432_v37, %v420_v46  ;;  %v3247_v21 = vrot.slane %v2268_v50, 6  ;;  %v153_v20 = vrot.slane %v2264_v63, 7  ;;  %v269_v33 = vmul.f32 %v216_v0, %v2070_v29 }
  0x28   :  { %v270_v46 = vmul.f32 %v2268_v50, %v2070_v29  ;;  %v277_v37 = vmul.f32 %v216_v0, %v2056_v26  ;;  %v256_v30 = vsel %vm250_vm4, %v243_v58, %v244_v36  ;;  %vm51_vm7 = vcmp.ge.s32.totalorder %v2270_v7, 1 }
  0x29   :  { %v448_v32 = vpack.c.bf16 %v441_v59, %v440_v1  ;;  %v255_v14 = vsel %vm250_vm4, %v244_v36, %v3247_v21  ;;  %v278_v59 = vmul.f32 %v2268_v50, %v2056_v26  ;;  %v285_v47 = vmul.f32 %v256_v30, %v2076_v31 }
  0x2a   :  { %v286_v2 = vmul.f32 %v255_v14, %v2076_v31  ;;  %v301_v43 = vmul.f32 %v256_v30, %v2065_v28  ;;  %v302_v17 = vmul.f32 %v255_v14, %v2065_v28  ;;  %v236_v0 = vadd.f32 %v228_v3, %v143_v42 }
  0x2b   :  { %1778 = vmatprep.mubr.msk.bf16.mxu1 %vm469_vm6, %v448_v32  ;;  %v237_v51 = vadd.f32 %v229_v5, %v144_v41  ;;  %v2303_v1 = vsel %vm51_vm7, 1.0, %v3248_v24  ;;  %v2307_v58 = vmul.f32 %v2099_v38, %v2019_v11  ;;  %1766 = vmatprep.mubr.msk.bf16.mxu0 %vm469_vm6, %v448_v32  ;;  %v293_v36 = vadd.f32 %v285_v47, %v269_v33 }
  0x2c   :  { %3264 = vst [vmem:[#allocation7_spill] sm:$0xff] %v2303_v1  ;;  %v294_v19 = vadd.f32 %v286_v2, %v270_v46  ;;  %v309_v61 = vadd.f32 %v301_v43, %v277_v37  ;;  %v2310_v62 = vadd.f32 %v302_v17, %v278_v59  ;;  %vm75_vm8 = vcmp.ge.s32.totalorder %v2270_v7, 2 }
  0x2d   :  { %vm99_vm9 = vcmp.ge.s32.totalorder %v2270_v7, 4  ;;  %v160_v42 = vsel %vm157_vm1, %v153_v20, %v154_v22  ;;  %v161_v41 = vsel %vm157_vm1, %v152_v48, %v153_v20  ;;  %v178_v3 = vmul.f32 %v2070_v29, %v2264_v63 }
  0x2e   :  { %v321_v5 = vmul.f32 %v2175_v40, %v293_v36  ;;  %v322_v32 = vmul.f32 %v2175_v40, %v294_v19  ;;  %v337_v33 = vrot.slane %v309_v61, 4  ;;  %v3246_v46 = vrot.slane %v2310_v62, 4 }
  0x2f   :  { %v362_v37 = vmul.f32 %v309_v61, %v2070_v29  ;;  %v363_v22 = vmul.f32 %v2310_v62, %v2070_v29  ;;  %v370_v14 = vmul.f32 %v309_v61, %v2056_v26  ;;  %v371_v48 = vmul.f32 %v2310_v62, %v2056_v26 }
  0x30   :  { %v329_v20 = vadd.f32 %v321_v5, %v236_v0  ;;  %v330_v30 = vadd.f32 %v322_v32, %v237_v51  ;;  %v348_v19 = vsel %vm343_vm5, %v337_v33, %v3246_v46  ;;  %v349_v59 = vsel %vm343_vm5, %v336_v49, %v337_v33 }
  0x31   :  { %v378_v47 = vmul.f32 %v349_v59, %v2076_v31  ;;  %v379_v2 = vmul.f32 %v348_v19, %v2076_v31  ;;  %v394_v61 = vmul.f32 %v349_v59, %v2065_v28  ;;  %v395_v43 = vmul.f32 %v348_v19, %v2065_v28 }
  0x32   :  { %v170_v17 = vmul.f32 %v2303_v1, %v161_v41  ;;  %v179_v0 = vmul.f32 %v2070_v29, %v2019_v11  ;;  %v186_v51 = vmul.f32 %v2056_v26, %v2264_v63  ;;  %v187_v44 = vmul.f32 %v2056_v26, %v2019_v11 }
  0x33   :  { %v386_v49 = vadd.f32 %v378_v47, %v362_v37  ;;  %v387_v36 = vadd.f32 %v379_v2, %v363_v22  ;;  %v402_v5 = vadd.f32 %v394_v61, %v370_v14  ;;  %v403_v32 = vadd.f32 %v395_v43, %v371_v48 }
  0x34   :  { %v194_v33 = vmul.f32 %v170_v17, %v2076_v31  ;;  %v195_v59 = vmul.f32 %v160_v42, %v2076_v31  ;;  %v210_v19 = vmul.f32 %v170_v17, %v2065_v28  ;;  %v211_v41 = vmul.f32 %v160_v42, %v2065_v28 }
  0x35   :  { %v414_v46 = vmul.f32 %v2202_v13, %v386_v49  ;;  %v415_v21 = vmul.f32 %v2202_v13, %v387_v36  ;;  %v434_v24 = vmul.f32 %v2221_v23, %v402_v5  ;;  %v435_v1 = vmul.f32 %v2221_v23, %v403_v32 }
  0x36   :  { %v202_v37 = vadd.f32 %v194_v33, %v178_v3  ;;  %v203_v22 = vadd.f32 %v195_v59, %v179_v0  ;;  %v218_v14 = vadd.f32 %v210_v19, %v186_v51  ;;  %v219_v48 = vadd.f32 %v211_v41, %v187_v44 }
  0x37   :  { %v422_v47 = vadd.f32 %v414_v46, %v329_v20  ;;  %v423_v2 = vadd.f32 %v415_v21, %v330_v30  ;;  %v3265_v61 = vmov 0.0   ;;  %v147_v3 = vmul.f32 %v2099_v38, %v2024_v12 }
  0x38   :  { %v2363_v43 = vsel %vm75_vm8, 1.0, %v3265_v61  ;;  %v2368_v42 = vsel %vm99_vm9, 1.0, %v3265_v61  ;;  %v246_v17 = vrot.slane %v218_v14, 6  ;;  %v247_v49 = vrot.slane %v219_v48, 6 }
  0x39   :  { %3266 = vst [vmem:[#allocation8_spill] sm:$0xff] %v2363_v43  ;;  %v2374_v0 = vmul.f32 %v2099_v38, %v2012_v9  ;;  %v442_v21 = vadd.f32 %v434_v24, %v422_v47  ;;  %v443_v46 = vadd.f32 %v435_v1, %v423_v2  ;;  %v230_v20 = vmul.f32 %v2137_v56, %v202_v37 }
  0x3a   :  { %v231_v30 = vmul.f32 %v2137_v56, %v203_v22  ;;  %v253_v7 = vsel %vm250_vm4, %v246_v17, %v247_v49  ;;  %v3267_v51 = vrot.slane %v2268_v50, 6  ;;  %v271_v36 = vmul.f32 %v218_v14, %v2070_v29 }
  0x3b   :  { %v272_v5 = vmul.f32 %v219_v48, %v2070_v29  ;;  %v2386_v38 = vpack.c.bf16 %v443_v46, %v442_v21  ;;  %v279_v1 = vmul.f32 %v218_v14, %v2056_v26  ;;  %v280_v32 = vmul.f32 %v219_v48, %v2056_v26 }
  0x3c   :  { %v254_v44 = vsel %vm250_vm4, %v3267_v51, %v246_v17  ;;  %v288_v33 = vmul.f32 %v253_v7, %v2076_v31  ;;  %v304_v59 = vmul.f32 %v253_v7, %v2065_v28  ;;  %v180_v50 = vmul.f32 %v2070_v29, %v2024_v12 }
  0x3d   :  { %v263_v24 = vmul.f32 %v2363_v43, %v254_v44  ;;  %v181_v19 = vmul.f32 %v2070_v29, %v2012_v9  ;;  %1779 = vmatmul.mubr.msk.bf16.vlgmr.msra.gmra.mrb[0].mxu1 %vm469_vm6, %v2386_v38  ;;  %v196_v22 = vmul.f32 %v2092_v35, %v2076_v31  ;;  %v197_v14 = vmul.f32 %v2086_v34, %v2076_v31 }
  0x3e   :  { %v238_v48 = vadd.f32 %v230_v20, %v2277_v60  ;;  %v239_v47 = vadd.f32 %v231_v30, %v2307_v58  ;;  %v296_v2 = vadd.f32 %v288_v33, %v272_v5  ;;  %v312_v17 = vadd.f32 %v304_v59, %v280_v32 }
  0x3f   :  { %v287_v41 = vmul.f32 %v263_v24, %v2076_v31  ;;  %v303_v37 = vmul.f32 %v263_v24, %v2065_v28  ;;  %v204_v7 = vadd.f32 %v196_v22, %v180_v50  ;;  %v3268_v51 = vrot.slane %v2130_v54, 6 }
  0x40   :  { %v324_v24 = vmul.f32 %v2175_v40, %v296_v2  ;;  %v340_v35 = vrot.slane %v312_v17, 4  ;;  %v205_v43 = vadd.f32 %v197_v14, %v181_v19  ;;  %v273_v34 = vmul.f32 %v2130_v54, %v2070_v29 }
  0x41   :  { %v295_v21 = vadd.f32 %v287_v41, %v271_v36  ;;  %v311_v46 = vadd.f32 %v303_v37, %v279_v1  ;;  %v252_v44 = vsel %vm250_vm4, %v247_v49, %v3268_v51  ;;  %v365_v20 = vmul.f32 %v312_v17, %v2070_v29 }
  0x42   :  { %v373_v30 = vmul.f32 %v312_v17, %v2056_v26  ;;  %v332_v36 = vadd.f32 %v324_v24, %v239_v47  ;;  %v232_v49 = vmul.f32 %v2137_v56, %v204_v7  ;;  %v3269_v33 = vrot.slane %v2310_v62, 4 }
  0x43   :  { %v323_v60 = vmul.f32 %v2175_v40, %v295_v21  ;;  %v339_v58 = vrot.slane %v311_v46, 4  ;;  %v364_v5 = vmul.f32 %v311_v46, %v2070_v29  ;;  %v372_v1 = vmul.f32 %v311_v46, %v2056_v26 }
  0x44   :  { %v274_v50 = vmul.f32 %v2132_v55, %v2070_v29  ;;  %v281_v19 = vmul.f32 %v2130_v54, %v2056_v26  ;;  %v233_v14 = vmul.f32 %v2137_v56, %v205_v43  ;;  %v289_v62 = vmul.f32 %v252_v44, %v2076_v31 }
  0x45   :  { %v346_v32 = vsel %vm343_vm5, %v339_v58, %v340_v35  ;;  %v347_v59 = vsel %vm343_vm5, %v3269_v33, %v339_v58  ;;  %v331_v47 = vadd.f32 %v323_v60, %v238_v48  ;;  %v290_v2 = vmul.f32 %v2155_v4, %v2076_v31 }
  0x46   :  { %v356_v41 = vmul.f32 %v2368_v42, %v347_v59  ;;  %v381_v37 = vmul.f32 %v346_v32, %v2076_v31  ;;  %v397_v22 = vmul.f32 %v346_v32, %v2065_v28  ;;  %v305_v17 = vmul.f32 %v252_v44, %v2065_v28 }
  0x47   :  { %v240_v7 = vadd.f32 %v232_v49, %v147_v3  ;;  %v297_v51 = vadd.f32 %v289_v62, %v273_v34  ;;  %v298_v24 = vadd.f32 %v290_v2, %v274_v50  ;;  %v241_v4 = vadd.f32 %v233_v14, %v2374_v0  ;;  %v453_v0 = vld [vmem:[%s3236_s3 + $0x8] sm:$0xff]  ;;  %v454_v50 = vld [vmem:[%s3236_s3 + $0x10] sm:$0xff] }
  0x48   :  { %v380_v55 = vmul.f32 %v356_v41, %v2076_v31  ;;  %v389_v21 = vadd.f32 %v381_v37, %v365_v20  ;;  %v396_v54 = vmul.f32 %v356_v41, %v2065_v28  ;;  %v405_v46 = vadd.f32 %v397_v22, %v373_v30 }
  0x49   :  { %v313_v58 = vadd.f32 %v305_v17, %v281_v19  ;;  %v325_v44 = vmul.f32 %v2175_v40, %v297_v51  ;;  %v367_v20 = vmul.f32 %v2181_v45, %v2070_v29  ;;  %v326_v49 = vmul.f32 %v2175_v40, %v298_v24  ;;  %v455_v19 = vld [vmem:[%s3236_s3 + $0x18] sm:$0xff] }
  0x4a   :  { %v388_v32 = vadd.f32 %v380_v55, %v364_v5  ;;  %v404_v56 = vadd.f32 %v396_v54, %v372_v1  ;;  %v417_v43 = vmul.f32 %v2202_v13, %v389_v21  ;;  %v437_v48 = vmul.f32 %v2221_v23, %v405_v46  ;;  %v452_v1 = vld [vmem:[%s3236_s3] sm:$0xff] }
  0x4b   :  { %v341_v60 = vrot.slane %v313_v58, 4  ;;  %v366_v5 = vmul.f32 %v313_v58, %v2070_v29  ;;  %v3270_v33 = vrot.slane %v2181_v45, 4  ;;  %v374_v29 = vmul.f32 %v313_v58, %v2056_v26 }
  0x4c   :  { %v416_v30 = vmul.f32 %v2202_v13, %v388_v32  ;;  %v425_v3 = vadd.f32 %v417_v43, %v332_v36  ;;  %v436_v34 = vmul.f32 %v2221_v23, %v404_v56  ;;  %v375_v37 = vmul.f32 %v2181_v45, %v2056_v26 }
  0x4d   :  { %v344_v59 = vsel %vm343_vm5, %v341_v60, %v3270_v33  ;;  %v345_v36 = vsel %vm343_vm5, %v340_v35, %v341_v60  ;;  %v463_v2 = vpack.c.bf16 %v453_v0, %v452_v1  ;;  %v333_v55 = vadd.f32 %v325_v44, %v240_v7 }
  0x4e   :  { %v424_v41 = vadd.f32 %v416_v30, %v331_v47  ;;  %v445_v40 = vadd.f32 %v437_v48, %v425_v3  ;;  %v382_v22 = vmul.f32 %v345_v36, %v2076_v31  ;;  %v383_v14 = vmul.f32 %v344_v59, %v2076_v31 }
  0x4f   :  { %v398_v35 = vmul.f32 %v345_v36, %v2065_v28  ;;  %v399_v62 = vmul.f32 %v344_v59, %v2065_v28  ;;  %v464_v54 = vpack.c.bf16 %v455_v19, %v454_v50  ;;  %v334_v46 = vadd.f32 %v326_v49, %v241_v4  ;;  %1762 = vmatprep.subr.bf16.mxu0 %v463_v2 }
  0x50   :  { %v444_v17 = vadd.f32 %v436_v34, %v424_v41  ;;  %v390_v21 = vadd.f32 %v382_v22, %v366_v5  ;;  %v391_v51 = vadd.f32 %v383_v14, %v367_v20  ;;  %1763 = vmatpush3.bf16.msra.mxu0 %v463_v2  ;;  %vm1955_vm10 = vmmov 0  }
  0x51   :  { %v406_v47 = vadd.f32 %v398_v35, %v374_v29  ;;  %v407_v24 = vadd.f32 %v399_v62, %v375_v37  ;;  %1764 = vmatprep.subr.bf16.mxu0 %v464_v54  ;;  %vm1553_vm11 = vcmask 523264   ;;  %vm1652_vm12 = vcmask 74752  }
  0x52   :  { %v450_v58 = vpack.c.bf16 %v445_v40, %v444_v17  ;;  %v418_v26 = vmul.f32 %v2202_v13, %v390_v21  ;;  %v419_v31 = vmul.f32 %v2202_v13, %v391_v51  ;;  %v1684_v13 = vld [vmem:[%s3236_s3 + $0x48] ss:$0 sm:$0xff]  ;;  %v2491_v40 = vld [vmem:[%s3236_s3 + $0x20] ss:$0 sm:$0xff] }
  0x53   :  { %v438_v45 = vmul.f32 %v2221_v23, %v406_v47  ;;  %v439_v28 = vmul.f32 %v2221_v23, %v407_v24 }
  0x54   :  { %1782 = vmatprep.mubr.msk.bf16.mxu1 %vm469_vm6, %v450_v58  ;;  %v426_v7 = vadd.f32 %v418_v26, %v333_v55  ;;  %v427_v32 = vadd.f32 %v419_v31, %v334_v46  ;;  %1765 = vmatpush3.bf16.msra.mxu0 %v464_v54 }
  0x56   :  { %v446_v56 = vadd.f32 %v438_v45, %v426_v7  ;;  %v447_v43 = vadd.f32 %v439_v28, %v427_v32 }
  0x57   :  { %1767 = vmatmul.mubr.msk.bf16.vlgmr.msra.gmra.mrb[0].mxu0 %vm469_vm6, %v2386_v38 }
  0x58   :  { %v451_v48 = vpack.c.bf16 %v447_v43, %v446_v56  ;;  %1770 = vmatprep.mubr.msk.bf16.mxu0 %vm469_vm6, %v450_v58 }
  0x5a   :  { %1783 = vmatmul.mubr.msk.bf16.gmra.mrb[4].mxu1 %vm469_vm6, %v451_v48 }
  0x5f   :  { %1771 = vmatmul.mubr.msk.bf16.gmra.mrb[4].mxu0 %vm469_vm6, %v451_v48 }
 0x110   :  { %v1780_v23 = vpop.f32.mrb[0].mxu1 }
 0x111   :  { %v596_v4 = vadd.f32 %v1780_v23, %v1684_v13  ;;  %v587_v44 = vpop.f32.mrb[1].mxu1 }
 0x112   :  { %v588_v60 = vadd.f32 %v1684_v13, %v587_v44  ;;  %v1781_v20 = vpop.f32.mrb[2].mxu1 }
 0x113   :  { %v1691_v30 = vmul.f32 -1.442695, %v596_v4  ;;  %v599_v3 = vadd.f32 %v1781_v20, %v1684_v13  ;;  %v590_v34 = vpop.f32.mrb[3].mxu1 }
 0x114   :  { %v1689_v5 = vmul.f32 -1.442695, %v588_v60  ;;  %v591_v38 = vadd.f32 %v1684_v13, %v590_v34 }
 0x115   :  { %1833 = vpow2.f32 %v1691_v30  ;;  %v1692_v1 = vmul.f32 -1.442695, %v599_v3 }
 0x116   :  { %1835 = vpow2.f32 %v1689_v5  ;;  %v1690_v0 = vmul.f32 -1.442695, %v591_v38 }
 0x117   :  { %1837 = vpow2.f32 %v1692_v1 }
 0x118   :  { %1839 = vpow2.f32 %v1690_v0 }
 0x11f   :  { %v1834_v49 = vpop.eup %1833 }
 0x120   :  { %v1836_v33 = vpop.eup %1835  ;;  %v644_v59 = vadd.f32 1.0, %v1834_v49 }
 0x121   :  { %v1838_v36 = vpop.eup %1837  ;;  %v642_v29 = vadd.f32 1.0, %v1836_v33 }
 0x122   :  { %v1840_v50 = vpop.eup %1839  ;;  %1841 = vrcp.f32 %v644_v59  ;;  %v645_v19 = vadd.f32 1.0, %v1838_v36 }
 0x123   :  { %1843 = vrcp.f32 %v642_v29  ;;  %v643_v41 = vadd.f32 1.0, %v1840_v50 }
 0x124   :  { %1845 = vrcp.f32 %v645_v19 }
 0x125   :  { %1847 = vrcp.f32 %v643_v41 }
 0x12a   :  { %v1768_v37 = vpop.f32.mrb[0].mxu0 }
 0x12b   :  { %v525_v22 = vadd.f32 %v1768_v37, %v2491_v40  ;;  %v516_v14 = vpop.f32.mrb[1].mxu0 }
 0x12c   :  { %v1842_v35 = vpop.eup %1841  ;;  %v517_v2 = vadd.f32 %v2491_v40, %v516_v14  ;;  %v1769_v17 = vpop.f32.mrb[2].mxu0 }
 0x12d   :  { %v1784_v62 = vpop.f32.mrb[4].mxu1  ;;  %v1844_v55 = vpop.eup %1843  ;;  %v668_v46 = vmul.f32 %v1842_v35, %v525_v22  ;;  %v528_v51 = vadd.f32 %v1769_v17, %v2491_v40 }
 0x12e   :  { %v612_v21 = vadd.f32 %v1784_v62, %v1684_v13  ;;  %v603_v54 = vpop.f32.mrb[5].mxu1  ;;  %v519_v47 = vpop.f32.mrb[3].mxu0  ;;  %v666_v31 = vmul.f32 %v1844_v55, %v517_v2 }
 0x12f   :  { %v1846_v24 = vpop.eup %1845  ;;  %v604_v58 = vadd.f32 %v1684_v13, %v603_v54  ;;  %v1785_v26 = vpop.f32.mrb[6].mxu1  ;;  %v520_v45 = vadd.f32 %v2491_v40, %v519_v47  ;;  %v2498_v48 = vadd.f32 %v668_v46, %v2207_v53 }
 0x130   :  { %v1848_v28 = vpop.eup %1847  ;;  %v1695_v7 = vmul.f32 -1.442695, %v612_v21  ;;  %v615_v32 = vadd.f32 %v1785_v26, %v1684_v13  ;;  %v606_v56 = vpop.f32.mrb[7].mxu1  ;;  %v669_v43 = vmul.f32 %v1846_v24, %v528_v51  ;;  %v2501_v60 = vadd.f32 %v666_v31, %v2002_v6 }
 0x131   :  { %v1693_v23 = vmul.f32 -1.442695, %v604_v58  ;;  %v607_v4 = vadd.f32 %v1684_v13, %v606_v56  ;;  %v667_v44 = vmul.f32 %v1848_v28, %v520_v45  ;;  %v688_v3 = vsel %vm469_vm6, %v2498_v48, 0.0 }
 0x132   :  { %1849 = vpow2.f32 %v1695_v7  ;;  %v1696_v20 = vmul.f32 -1.442695, %v615_v32  ;;  %v2504_v30 = vadd.f32 %v669_v43, %v2230_v39  ;;  %689 = vadd.xlane.f32.xlu1 %v688_v3  ;;  %v1772_v53 = vpop.f32.mrb[4].mxu0  ;;  %v682_v13 = vsel %vm469_vm6, %v2501_v60, 0.0 }
 0x133   :  { %1851 = vpow2.f32 %v1693_v23  ;;  %v1694_v34 = vmul.f32 -1.442695, %v607_v4  ;;  %v2509_v5 = vadd.f32 %v667_v44, %v2007_v8  ;;  %v532_v6 = vpop.f32.mrb[5].mxu0  ;;  %683 = vadd.xlane.f32.xlu0 %v682_v13  ;;  %v714_v39 = vmul.f32 %v2501_v60, %v2501_v60  ;;  %v1704_v13 = vld [vmem:[%s3236_s3 + $0x78] sm:$0xff] }
 0x134   :  { %1853 = vpow2.f32 %v1696_v20  ;;  %v1773_v38 = vpop.f32.mrb[6].mxu0  ;;  %v691_v8 = vsel %vm469_vm6, %v2504_v30, 0.0  ;;  %v541_v35 = vadd.f32 %v1772_v53, %v2491_v40  ;;  %v533_v62 = vadd.f32 %v2491_v40, %v532_v6  ;;  %v1705_v6 = vld [vmem:[%s3236_s3 + $0x80] sm:$0xff] }
 0x135   :  { %1855 = vpow2.f32 %v1694_v34  ;;  %v535_v1 = vpop.f32.mrb[7].mxu0  ;;  %v722_v0 = vsel %vm469_vm6, %v714_v39, 0.0  ;;  %v715_v49 = vmul.f32 %v2509_v5, %v2509_v5  ;;  %v685_v33 = vsel %vm469_vm6, %v2509_v5, 0.0  ;;  %v1699_v39 = vld [vmem:[%s3236_s3 + $0x50] sm:$0xff] }
 0x136   :  { %723 = vadd.xlane.f32.xlu1 %v722_v0  ;;  %v544_v2 = vadd.f32 %v1773_v38, %v2491_v40  ;;  %v536_v55 = vadd.f32 %v2491_v40, %v535_v1  ;;  %v716_v43 = vmul.f32 %v2498_v48, %v2498_v48  ;;  %v717_v3 = vmul.f32 %v2504_v30, %v2504_v30  ;;  %v1700_v1 = vld [vmem:[%s3236_s3 + $0x58] sm:$0xff]  ;;  %v1706_v0 = vld [vmem:[%s3236_s3 + $0x88] sm:$0xff] }
 0x137   :  { %692 = vadd.xlane.f32.xlu0 %v691_v8  ;;  %v725_v59 = vsel %vm469_vm6, %v715_v49, 0.0  ;;  %v1260_v38 = vpack.c.bf16 %v1705_v6, %v1704_v13  ;;  %v1707_v8 = vld [vmem:[%s3236_s3 + $0x90] sm:$0xff]  ;;  %v1177_v49 = vpack.c.bf16 %v1700_v1, %v1699_v39 }
 0x138   :  { %v728_v4 = vsel %vm469_vm6, %v716_v43, 0.0  ;;  %v731_v53 = vsel %vm469_vm6, %v717_v3, 0.0 }
 0x139   :  { %1798 = vmatprep.subr.bf16.mxu1 %v1260_v38  ;;  %1786 = vmatprep.subr.bf16.mxu0 %v1177_v49 }
 0x13a   :  { %686 = vadd.xlane.f32.xlu1 %v685_v33  ;;  %v1261_v33 = vpack.c.bf16 %v1707_v8, %v1706_v0  ;;  %1799 = vmatpush3.bf16.msra.mxu1 %v1260_v38 }
 0x13b   :  { %726 = vadd.xlane.f32.xlu0 %v725_v59  ;;  %v1701_v59 = vld [vmem:[%s3236_s3 + $0x60] sm:$0xff]  ;;  %1787 = vmatpush3.bf16.msra.mxu0 %v1177_v49 }
 0x13c   :  { %v1850_v36 = vpop.eup %1849  ;;  %1800 = vmatprep.subr.bf16.mxu1 %v1261_v33 }
 0x13d   :  { %v1852_v29 = vpop.eup %1851  ;;  %v648_v50 = vadd.f32 1.0, %v1850_v36  ;;  %v1702_v36 = vld [vmem:[%s3236_s3 + $0x68] sm:$0xff] }
 0x13e   :  { %v1854_v19 = vpop.eup %1853  ;;  %v646_v41 = vadd.f32 1.0, %v1852_v29  ;;  %v1178_v29 = vpack.c.bf16 %v1702_v36, %v1701_v59  ;;  %1801 = vmatpush3.bf16.msra.mxu1 %v1261_v33  ;;  %v3271_v33 = vsub.s32 3, %v2014_v10 }
 0x13f   :  { %v1856_v37 = vpop.eup %1855  ;;  %1857 = vrcp.f32 %v648_v50  ;;  %v649_v22 = vadd.f32 1.0, %v1854_v19  ;;  %1822 = vmatprep.subr.bf16.mxu1 %v3265_v61 }
 0x140   :  { %1859 = vrcp.f32 %v646_v41  ;;  %v647_v14 = vadd.f32 1.0, %v1856_v37  ;;  %1788 = vmatprep.subr.bf16.mxu0 %v1178_v29 }
 0x141   :  { %1861 = vrcp.f32 %v649_v22  ;;  %1789 = vmatpush3.bf16.msra.mxu0 %v1178_v29 }
 0x142   :  { %1863 = vrcp.f32 %v647_v14  ;;  %1810 = vmatprep.subr.bf16.mxu0 %v3265_v61 }
 0x149   :  { %v1858_v17 = vpop.eup %1857 }
 0x14a   :  { %v1860_v21 = vpop.eup %1859  ;;  %v672_v54 = vmul.f32 %v1858_v17, %v541_v35 }
 0x14b   :  { %v1862_v46 = vpop.eup %1861  ;;  %v670_v51 = vmul.f32 %v1860_v21, %v533_v62 }
 0x14c   :  { %v1864_v47 = vpop.eup %1863  ;;  %v2528_v24 = vadd.f32 %v672_v54, %v2024_v12  ;;  %v673_v58 = vmul.f32 %v1862_v46, %v544_v2 }
 0x14d   :  { %v671_v26 = vmul.f32 %v1864_v47, %v536_v55  ;;  %v2531_v31 = vadd.f32 %v670_v51, %v2264_v63 }
 0x14e   :  { %v2534_v45 = vadd.f32 %v673_v58, %v2012_v9  ;;  %v700_v28 = vsel %vm469_vm6, %v2528_v24, 0.0  ;;  %v720_v7 = vmul.f32 %v2528_v24, %v2528_v24 }
 0x14f   :  { %701 = vadd.xlane.f32.xlu1 %v700_v28  ;;  %v2543_v12 = vadd.f32 %v671_v26, %v2019_v11  ;;  %v694_v63 = vsel %vm469_vm6, %v2531_v31, 0.0  ;;  %v718_v44 = vmul.f32 %v2531_v31, %v2531_v31 }
 0x150   :  { %v703_v40 = vsel %vm469_vm6, %v2534_v45, 0.0  ;;  %v740_v9 = vsel %vm469_vm6, %v720_v7, 0.0  ;;  %v721_v32 = vmul.f32 %v2534_v45, %v2534_v45  ;;  %v2596_v7 = vrot.slane %v2061_v27, %v2038_v16 }
 0x151   :  { %704 = vadd.xlane.f32.xlu0 %v703_v40  ;;  %v697_v56 = vsel %vm469_vm6, %v2543_v12, 0.0  ;;  %v719_v23 = vmul.f32 %v2543_v12, %v2543_v12  ;;  %v734_v34 = vsel %vm469_vm6, %v718_v44, 0.0 }
 0x152   :  { %v743_v11 = vsel %vm469_vm6, %v721_v32, 0.0 }
 0x153   :  { %695 = vadd.xlane.f32.xlu1 %v694_v63  ;;  %v737_v20 = vsel %vm469_vm6, %v719_v23, 0.0 }
 0x155   :  { %741 = vadd.xlane.f32.xlu0 %v740_v9  ;;  %v2600_v9 = vrot.slane %v2061_v27, %v2042_v18 }
 0x157   :  { %698 = vadd.xlane.f32.xlu1 %v697_v56 }
 0x159   :  { %744 = vadd.xlane.f32.xlu0 %v743_v11 }
 0x15b   :  { %729 = vadd.xlane.f32.xlu1 %v728_v4 }
 0x15d   :  { %738 = vadd.xlane.f32.xlu0 %v737_v20 }
 0x15f   :  { %735 = vadd.xlane.f32.xlu1 %v734_v34 }
 0x161   :  { %732 = vadd.xlane.f32.xlu0 %v731_v53 }
 0x1bf   :  { %v690_v50 = vpop.xlane.xlu1 %689 }
 0x1c0   :  { %v684_v19 = vpop.xlane.xlu0 %683  ;;  %v2628_v8 = vmul.f32 0.03125, %v690_v50 }
 0x1c1   :  { %v706_v41 = vmul.f32 0.03125, %v684_v19 }
 0x1c3   :  { %v754_v37 = vmul.f32 %v706_v41, %v706_v41  ;;  %v724_v22 = vpop.xlane.xlu1 %723  ;;  %v778_v28 = vsub.f32 %v2501_v60, %v706_v41 }
 0x1c4   :  { %v746_v14 = vmul.f32 0.03125, %v724_v22  ;;  %v2591_v35 = vpop.xlane.xlu0 %692  ;;  %v3272_v22 = vsub.s32 7, %v2014_v10 }
 0x1c6   :  { %v762_v62 = vsub.f32 %v746_v14, %v754_v37 }
 0x1c7   :  { %v687_v2 = vpop.xlane.xlu1 %686 }
 0x1c8   :  { %v770_v17 = vmax.f32 %v762_v62, 0.0  ;;  %v707_v55 = vmul.f32 0.03125, %v687_v2  ;;  %v727_v21 = vpop.xlane.xlu0 %726 }
 0x1c9   :  { %v747_v54 = vmul.f32 0.03125, %v727_v21  ;;  %v756_v21 = vmul.f32 %v2628_v8, %v2628_v8 }
 0x1ca   :  { %v786_v46 = vadd.f32 1e-05, %v770_v17  ;;  %v755_v51 = vmul.f32 %v707_v55, %v707_v55  ;;  %v779_v56 = vsub.f32 %v2509_v5, %v707_v55  ;;  %v2616_v5 = vld [vmem:[%s3235_s2 + $0x10] sm:$0xff] }
 0x1cb   :  { %v2624_v39 = vrot.slane %v2616_v5, %v2042_v18  ;;  %v2633_v59 = vrot.slane %v2616_v5, %v3271_v33  ;;  %v2648_v14 = vrot.slane %v2616_v5, %v3272_v22  ;;  %v2669_v33 = vrot.slane %v2616_v5, %v2035_v15 }
 0x1cc   :  { %1865 = vrsqrt.f32 %v786_v46  ;;  %v763_v47 = vsub.f32 %v747_v54, %v755_v51 }
 0x1ce   :  { %v771_v58 = vmax.f32 %v763_v47, 0.0 }
 0x1d0   :  { %v787_v26 = vadd.f32 1e-05, %v771_v58 }
 0x1d2   :  { %1867 = vrsqrt.f32 %v787_v26 }
 0x1d6   :  { %v1866_v40 = vpop.eup %1865 }
 0x1d7   :  { %v802_v63 = vmul.f32 %v1866_v40, %v778_v28 }
 0x1d9   :  { %v814_v32 = vmul.f32 %v2596_v7, %v802_v63 }
 0x1db   :  { %v2607_v60 = vadd.f32 %v2600_v9, %v814_v32  ;;  %v2660_v32 = vmul.f32 0.03125, %v2591_v35 }
 0x1dc   :  { %v702_v43 = vpop.xlane.xlu1 %701  ;;  %v1868_v11 = vpop.eup %1867 }
 0x1dd   :  { %v803_v23 = vmul.f32 %v1868_v11, %v779_v56  ;;  %v2604_v44 = vmul.f32 0.03125, %v702_v43  ;;  %v865_v1 = vrot.slane %v2607_v60, 7 }
 0x1de   :  { %v705_v4 = vpop.xlane.xlu0 %704 }
 0x1df   :  { %v815_v20 = vmul.f32 %v2596_v7, %v803_v23  ;;  %v760_v53 = vmul.f32 %v2604_v44, %v2604_v44  ;;  %v2620_v13 = vmul.f32 0.03125, %v705_v4  ;;  %v784_v22 = vsub.f32 %v2528_v24, %v2604_v44 }
 0x1e0   :  { %v696_v3 = vpop.xlane.xlu1 %695 }
 0x1e1   :  { %v2611_v34 = vadd.f32 %v2600_v9, %v815_v20  ;;  %v761_v50 = vmul.f32 %v2620_v13, %v2620_v13  ;;  %v2650_v62 = vmul.f32 0.03125, %v696_v3  ;;  %v785_v44 = vsub.f32 %v2534_v45, %v2620_v13 }
 0x1e2   :  { %v742_v27 = vpop.xlane.xlu0 %741 }
 0x1e3   :  { %v752_v6 = vmul.f32 0.03125, %v742_v27  ;;  %v866_v0 = vrot.slane %v2611_v34, 7  ;;  %v890_v17 = vmul.f32 %v2633_v59, %v2611_v34  ;;  %v758_v56 = vmul.f32 %v2650_v62, %v2650_v62 }
 0x1e4   :  { %v699_v38 = vpop.xlane.xlu1 %698 }
 0x1e5   :  { %v768_v49 = vsub.f32 %v752_v6, %v760_v53  ;;  %v2635_v36 = vmul.f32 0.03125, %v699_v38  ;;  %v879_v19 = vsel %vm157_vm1, %v865_v1, %v866_v0 }
 0x1e6   :  { %v745_v29 = vpop.xlane.xlu0 %744  ;;  %v906_v55 = vmul.f32 %v879_v19, %v2624_v39 }
 0x1e7   :  { %v776_v41 = vmax.f32 %v768_v49, 0.0  ;;  %v753_v37 = vmul.f32 0.03125, %v745_v29  ;;  %v759_v47 = vmul.f32 %v2635_v36, %v2635_v36  ;;  %v757_v49 = vmul.f32 %v2660_v32, %v2660_v32 }
 0x1e8   :  { %v730_v2 = vpop.xlane.xlu1 %729  ;;  %v914_v26 = vadd.f32 %v906_v55, %v890_v17  ;;  %v2676_v17 = vld [vmem:[%s3235_s2 + $0x18] sm:$0x7] }
 0x1e9   :  { %v792_v54 = vadd.f32 1e-05, %v776_v41  ;;  %v769_v46 = vsub.f32 %v753_v37, %v761_v50  ;;  %v748_v51 = vmul.f32 0.03125, %v730_v2  ;;  %3273 = vst [vmem:[#allocation9_spill] sm:$0xff] %v2676_v17 }
 0x1ea   :  { %v739_v58 = vpop.xlane.xlu0 %738  ;;  %v942_v11 = vmul.f32 %v2648_v14, %v914_v26 }
 0x1eb   :  { %1869 = vrsqrt.f32 %v792_v54  ;;  %v777_v28 = vmax.f32 %v769_v46, 0.0  ;;  %v764_v40 = vsub.f32 %v748_v51, %v756_v21  ;;  %v751_v63 = vmul.f32 0.03125, %v739_v58 }
 0x1ec   :  { %v736_v43 = vpop.xlane.xlu1 %735  ;;  %v2680_v21 = vrot.slane %v2616_v5, %v2038_v16  ;;  %v922_v54 = vmul.f32 %v879_v19, %v2669_v33  ;;  %v3274_v19 = vsub.s32 6, %v2014_v10 }
 0x1ed   :  { %v793_v23 = vadd.f32 1e-05, %v777_v28  ;;  %v772_v4 = vmax.f32 %v764_v40, 0.0  ;;  %v767_v20 = vsub.f32 %v751_v63, %v759_v47  ;;  %v750_v3 = vmul.f32 0.03125, %v736_v43 }
 0x1ee   :  { %v733_v27 = vpop.xlane.xlu0 %732  ;;  %v2685_v47 = vrot.slane %v2676_v17, %v2035_v15  ;;  %v898_v24 = vmul.f32 %v2680_v21, %v2611_v34  ;;  %v2697_v40 = vrot.slane %v2616_v5, %v3274_v19  ;;  %v3275_v15 = vsub.s32 5, %v2014_v10 }
 0x1ef   :  { %1871 = vrsqrt.f32 %v793_v23  ;;  %v788_v53 = vadd.f32 1e-05, %v772_v4  ;;  %v775_v6 = vmax.f32 %v767_v20, 0.0  ;;  %v766_v38 = vsub.f32 %v750_v3, %v758_v56 }
 0x1f0   :  { %v749_v35 = vmul.f32 0.03125, %v733_v27  ;;  %v2692_v28 = vadd.f32 %v922_v54, %v898_v24  ;;  %v2702_v63 = vrot.slane %v2616_v5, %v3275_v15  ;;  %v780_v56 = vsub.f32 %v2498_v48, %v2628_v8 }
 0x1f1   :  { %1873 = vrsqrt.f32 %v788_v53  ;;  %v791_v29 = vadd.f32 1e-05, %v775_v6  ;;  %v774_v50 = vmax.f32 %v766_v38, 0.0  ;;  %v3276_v43 = vsub.s32 4, %v2014_v10 }
 0x1f2   :  { %v765_v41 = vsub.f32 %v749_v35, %v757_v49  ;;  %v781_v4 = vsub.f32 %v2504_v30, %v2660_v32  ;;  %v2718_v3 = vmul.f32 %v2685_v47, %v2607_v60  ;;  %v783_v48 = vsub.f32 %v2543_v12, %v2635_v36 }
 0x1f3   :  { %1875 = vrsqrt.f32 %v791_v29  ;;  %v790_v37 = vadd.f32 1e-05, %v774_v50  ;;  %v2709_v23 = vrot.slane %v2616_v5, %v3276_v43  ;;  %v889_v5 = vmul.f32 %v2633_v59, %v2607_v60 }
 0x1f4   :  { %v773_v2 = vmax.f32 %v765_v41, 0.0  ;;  %v782_v30 = vsub.f32 %v2531_v31, %v2650_v62  ;;  %v858_v32 = vmul.f32 %v2685_v47, %v2611_v34  ;;  %v897_v6 = vmul.f32 %v2680_v21, %v2607_v60 }
 0x1f5   :  { %v1870_v55 = vpop.eup %1869  ;;  %1877 = vrsqrt.f32 %v790_v37  ;;  %v958_v38 = vrot.slane %v2692_v28, 6  ;;  %v2738_v35 = vmul.f32 %v2692_v28, %v2633_v59  ;;  %v2747_v41 = vmul.f32 %v2692_v28, %v2680_v21 }
 0x1f6   :  { %v808_v46 = vmul.f32 %v1870_v55, %v784_v22  ;;  %v789_v51 = vadd.f32 1e-05, %v773_v2  ;;  %v2743_v50 = vadd.f32 %v942_v11, %v858_v32 }
 0x1f8   :  { %v820_v58 = vmul.f32 %v2596_v7, %v808_v46  ;;  %1879 = vrsqrt.f32 %v789_v51 }
 0x1f9   :  { %v1872_v26 = vpop.eup %1871 }
 0x1fa   :  { %v809_v45 = vmul.f32 %v1872_v26, %v785_v44  ;;  %v2714_v20 = vadd.f32 %v2600_v9, %v820_v58 }
 0x1fb   :  { %v1874_v13 = vpop.eup %1873 }
 0x1fc   :  { %v821_v8 = vmul.f32 %v2596_v7, %v809_v45  ;;  %v804_v27 = vmul.f32 %v1874_v13, %v780_v56  ;;  %v871_v31 = vrot.slane %v2714_v20, 7  ;;  %v903_v62 = vmul.f32 %v2680_v21, %v2714_v20 }
 0x1fd   :  { %v1876_v53 = vpop.eup %1875  ;;  %v2755_v55 = vmul.f32 %v2685_v47, %v2714_v20  ;;  %v2766_v51 = vmul.f32 %v2633_v59, %v2714_v20 }
 0x1fe   :  { %v2733_v12 = vadd.f32 %v2600_v9, %v821_v8  ;;  %v816_v36 = vmul.f32 %v2596_v7, %v804_v27  ;;  %v807_v49 = vmul.f32 %v1876_v53, %v783_v48 }
 0x1ff   :  { %v1878_v29 = vpop.eup %1877 }
 0x200   :  { %v2750_v37 = vadd.f32 %v2600_v9, %v816_v36  ;;  %v819_v22 = vmul.f32 %v2596_v7, %v807_v49  ;;  %v806_v2 = vmul.f32 %v1878_v29, %v782_v30  ;;  %v904_v54 = vmul.f32 %v2680_v21, %v2733_v12 }
 0x201   :  { %v872_v11 = vrot.slane %v2733_v12, 7  ;;  %v2762_v46 = vmul.f32 %v2685_v47, %v2733_v12  ;;  %v2775_v28 = vmul.f32 %v2633_v59, %v2733_v12 }
 0x202   :  { %v1880_v24 = vpop.eup %1879  ;;  %v867_v44 = vrot.slane %v2750_v37, 7  ;;  %v2770_v58 = vadd.f32 %v2600_v9, %v819_v22  ;;  %v818_v26 = vmul.f32 %v2596_v7, %v806_v2  ;;  %v899_v19 = vmul.f32 %v2680_v21, %v2750_v37 }
 0x203   :  { %v805_v15 = vmul.f32 %v1880_v24, %v781_v4  ;;  %v2781_v56 = vsel %vm157_vm1, %v871_v31, %v872_v11  ;;  %v880_v45 = vsel %vm157_vm1, %v872_v11, %v865_v1  ;;  %v891_v1 = vmul.f32 %v2633_v59, %v2750_v37 }
 0x204   :  { %v3253_v13 = vrot.slane %v2770_v58, 7  ;;  %v2789_v43 = vadd.f32 %v2600_v9, %v818_v26  ;;  %v878_v48 = vsel %vm157_vm1, %v866_v0, %v867_v44  ;;  %v881_v4 = vmul.f32 %v2052_v25, %v880_v45 }
 0x205   :  { %v817_v8 = vmul.f32 %v2596_v7, %v805_v15  ;;  %v923_v27 = vmul.f32 %v878_v48, %v2669_v33  ;;  %v928_v53 = vmul.f32 %v2781_v56, %v2669_v33  ;;  %v907_v7 = vmul.f32 %v878_v48, %v2624_v39 }
 0x206   :  { %v2806_v30 = vsel %vm157_vm1, %v3253_v13, %v871_v31  ;;  %v905_v0 = vmul.f32 %v881_v4, %v2624_v39  ;;  %v921_v25 = vmul.f32 %v881_v4, %v2669_v33  ;;  %v2822_v31 = vmul.f32 %v2685_v47, %v2750_v37 }
 0x207   :  { %v927_v32 = vmul.f32 %v2806_v30, %v2669_v33  ;;  %v2814_v36 = vadd.f32 %v2600_v9, %v817_v8  ;;  %v2816_v49 = vadd.f32 %v923_v27, %v899_v19  ;;  %v2818_v29 = vadd.f32 %v928_v53, %v904_v54 }
 0x208   :  { %v913_v22 = vadd.f32 %v905_v0, %v889_v5  ;;  %v929_v2 = vadd.f32 %v921_v25, %v897_v6  ;;  %v915_v11 = vadd.f32 %v907_v7, %v891_v1  ;;  %v2830_v9 = vmul.f32 %v2685_v47, %v2789_v43 }
 0x209   :  { %v2824_v24 = vadd.f32 %v927_v32, %v903_v62  ;;  %v3256_v26 = vrot.slane %v2814_v36, 7  ;;  %v3254_v15 = vrot.slane %v2816_v49, 6  ;;  %v900_v54 = vmul.f32 %v2680_v21, %v2814_v36 }
 0x20a   :  { %v941_v5 = vmul.f32 %v2648_v14, %v913_v22  ;;  %v957_v6 = vrot.slane %v929_v2, 6  ;;  %v964_v19 = vrot.slane %v2818_v29, 6  ;;  %v981_v48 = vmul.f32 %v929_v2, %v2633_v59 }
 0x20b   :  { %v3252_v45 = vrot.slane %v2824_v24, 6  ;;  %v970_v62 = vsel %vm250_vm4, %v958_v38, %v3254_v15  ;;  %v989_v4 = vmul.f32 %v929_v2, %v2680_v21  ;;  %v991_v1 = vmul.f32 %v2816_v49, %v2680_v21 }
 0x20c   :  { %v949_v8 = vadd.f32 %v941_v5, %v2718_v3  ;;  %v971_v27 = vsel %vm250_vm4, %v957_v6, %v958_v38  ;;  %v972_v53 = vsel %vm250_vm4, %v964_v19, %v957_v6  ;;  %v996_v38 = vmul.f32 %v2818_v29, %v2680_v21 }
 0x20d   :  { %v2854_v0 = vsel %vm250_vm4, %v3252_v45, %v964_v19  ;;  %v973_v25 = vmul.f32 %v2126_v52, %v972_v53  ;;  %v998_v7 = vmul.f32 %v971_v27, %v2624_v39  ;;  %v1014_v3 = vmul.f32 %v971_v27, %v2669_v33 }
 0x20e   :  { %v1015_v32 = vmul.f32 %v970_v62, %v2669_v33  ;;  %v1020_v22 = vmul.f32 %v2854_v0, %v2669_v33  ;;  %v877_v2 = vsel %vm157_vm1, %v867_v44, %v3256_v26  ;;  %v860_v45 = vmul.f32 %v2685_v47, %v2814_v36 }
 0x20f   :  { %v997_v5 = vmul.f32 %v973_v25, %v2624_v39  ;;  %v1006_v52 = vadd.f32 %v998_v7, %v2738_v35  ;;  %v1013_v6 = vmul.f32 %v973_v25, %v2669_v33  ;;  %v1022_v19 = vadd.f32 %v1014_v3, %v2747_v41 }
 0x210   :  { %v2872_v27 = vadd.f32 %v1015_v32, %v991_v1  ;;  %v2874_v53 = vadd.f32 %v1020_v22, %v996_v38  ;;  %v908_v13 = vmul.f32 %v877_v2, %v2624_v39  ;;  %v892_v1 = vmul.f32 %v2633_v59, %v2814_v36 }
 0x211   :  { %v1005_v15 = vadd.f32 %v997_v5, %v981_v48  ;;  %v1021_v18 = vadd.f32 %v1013_v6, %v989_v4  ;;  %v1034_v44 = vmul.f32 %v2697_v40, %v1006_v52  ;;  %v1050_v26 = vrot.slane %v1022_v19, 4 }
 0x212   :  { %v3257_v35 = vrot.slane %v2872_v27, 4  ;;  %v3258_v25 = vrot.slane %v2874_v53, 4  ;;  %v1074_v41 = vmul.f32 %v1022_v19, %v2633_v59  ;;  %v1082_v48 = vmul.f32 %v1022_v19, %v2680_v21 }
 0x213   :  { %v1033_v7 = vmul.f32 %v2697_v40, %v1005_v15  ;;  %v1042_v3 = vadd.f32 %v1034_v44, %v2743_v50  ;;  %v1049_v38 = vrot.slane %v1021_v18, 4  ;;  %v1073_v32 = vmul.f32 %v1021_v18, %v2633_v59 }
 0x214   :  { %v1062_v4 = vsel %vm343_vm5, %v1050_v26, %v3257_v35  ;;  %v916_v22 = vadd.f32 %v908_v13, %v892_v1  ;;  %v924_v5 = vmul.f32 %v877_v2, %v2669_v33  ;;  %v1081_v15 = vmul.f32 %v1021_v18, %v2680_v21 }
 0x215   :  { %v1041_v52 = vadd.f32 %v1033_v7, %v949_v8  ;;  %v1063_v6 = vsel %vm343_vm5, %v1049_v38, %v1050_v26  ;;  %v1064_v50 = vsel %vm343_vm5, %v3258_v25, %v1049_v38  ;;  %v1091_v8 = vmul.f32 %v1062_v4, %v2624_v39 }
 0x216   :  { %v1065_v19 = vmul.f32 %v2189_v57, %v1064_v50  ;;  %v1090_v44 = vmul.f32 %v1063_v6, %v2624_v39  ;;  %v1106_v35 = vmul.f32 %v1063_v6, %v2669_v33  ;;  %v2904_v13 = vadd.f32 %v924_v5, %v900_v54 }
 0x217   :  { %v943_v2 = vmul.f32 %v2648_v14, %v915_v11  ;;  %v944_v26 = vmul.f32 %v2648_v14, %v916_v22  ;;  %v999_v1 = vmul.f32 %v970_v62, %v2624_v39  ;;  %v983_v54 = vmul.f32 %v2816_v49, %v2633_v59 }
 0x218   :  { %v1089_v7 = vmul.f32 %v1065_v19, %v2624_v39  ;;  %v1098_v38 = vadd.f32 %v1090_v44, %v1074_v41  ;;  %v1105_v18 = vmul.f32 %v1065_v19, %v2669_v33  ;;  %v1114_v57 = vadd.f32 %v1106_v35, %v1082_v48 }
 0x219   :  { %v951_v50 = vadd.f32 %v943_v2, %v2822_v31  ;;  %v3259_v6 = vrot.slane %v2904_v13, 6  ;;  %v984_v11 = vmul.f32 %v2904_v13, %v2633_v59  ;;  %v3277_v35 = vrot.slane %v2816_v49, 6 }
 0x21a   :  { %v1097_v5 = vadd.f32 %v1089_v7, %v1073_v32  ;;  %v1113_v22 = vadd.f32 %v1105_v18, %v1081_v15  ;;  %v1126_v62 = vmul.f32 %v2702_v63, %v1098_v38  ;;  %v1146_v25 = vmul.f32 %v2709_v23, %v1114_v57 }
 0x21b   :  { %v969_v31 = vsel %vm250_vm4, %v3277_v35, %v3259_v6  ;;  %v992_v41 = vmul.f32 %v2904_v13, %v2680_v21  ;;  %v1007_v48 = vadd.f32 %v999_v1, %v983_v54  ;;  %v1075_v19 = vmul.f32 %v2872_v27, %v2633_v59 }
 0x21c   :  { %v1125_v32 = vmul.f32 %v2702_v63, %v1097_v5  ;;  %v1134_v15 = vadd.f32 %v1126_v62, %v1042_v3  ;;  %v1145_v44 = vmul.f32 %v2709_v23, %v1113_v22  ;;  %v1000_v2 = vmul.f32 %v969_v31, %v2624_v39 }
 0x21d   :  { %v1016_v7 = vmul.f32 %v969_v31, %v2669_v33  ;;  %v1035_v49 = vmul.f32 %v2697_v40, %v1007_v48  ;;  %v1083_v38 = vmul.f32 %v2872_v27, %v2680_v21  ;;  %v1099_v18 = vadd.f32 %v1091_v8, %v1075_v19 }
 0x21e   :  { %v1133_v57 = vadd.f32 %v1125_v32, %v1041_v52  ;;  %v1154_v1 = vadd.f32 %v1146_v25, %v1134_v15  ;;  %v1008_v54 = vadd.f32 %v1000_v2, %v984_v11  ;;  %v1107_v35 = vmul.f32 %v1062_v4, %v2669_v33 }
 0x21f   :  { %v952_v6 = vadd.f32 %v944_v26, %v860_v45  ;;  %v2938_v5 = vadd.f32 %v1016_v7, %v992_v41  ;;  %v1043_v3 = vadd.f32 %v1035_v49, %v951_v50  ;;  %v1127_v22 = vmul.f32 %v2702_v63, %v1099_v18  ;;  %v3281_v7 = vld [vmem:[#allocation7_spill] sm:$0xff] }
 0x220   :  { %v1153_v62 = vadd.f32 %v1145_v44, %v1133_v57  ;;  %v1036_v31 = vmul.f32 %v2697_v40, %v1008_v54  ;;  %v1115_v17 = vadd.f32 %v1107_v35, %v1083_v38  ;;  %v869_v48 = vrot.slane %v2789_v43, 7 }
 0x221   :  { %v1052_v16 = vrot.slane %v2938_v5, 4  ;;  %v1076_v25 = vmul.f32 %v2938_v5, %v2633_v59  ;;  %v1084_v4 = vmul.f32 %v2938_v5, %v2680_v21  ;;  %v1135_v45 = vadd.f32 %v1127_v22, %v1043_v3 }
 0x222   :  { %v1161_v52 = vpack.c.bf16 %v1154_v1, %v1153_v62  ;;  %v1044_v8 = vadd.f32 %v1036_v31, %v952_v6  ;;  %v1147_v26 = vmul.f32 %v2709_v23, %v1115_v17  ;;  %v3278_v50 = vrot.slane %v2770_v58, 7 }
 0x223   :  { %v3279_v41 = vrot.slane %v2872_v27, 4  ;;  %v3280_v32 = vrot.slane %v2814_v36, 7  ;;  %v893_v17 = vmul.f32 %v2633_v59, %v2789_v43  ;;  %v894_v6 = vmul.f32 %v2633_v59, %v2770_v58 }
 0x224   :  { %v875_v11 = vsel %vm157_vm1, %v869_v48, %v3278_v50  ;;  %1790 = vmatprep.mubr.msk.bf16.mxu0 %vm469_vm6, %v1161_v52  ;;  %1802 = vmatprep.mubr.msk.bf16.mxu1 %vm469_vm6, %v1161_v52  ;;  %v1155_v2 = vadd.f32 %v1147_v26, %v1135_v45  ;;  %v901_v38 = vmul.f32 %v2680_v21, %v2789_v43 }
 0x225   :  { %v1061_v19 = vsel %vm343_vm5, %v3279_v41, %v1052_v16  ;;  %v876_v15 = vsel %vm157_vm1, %v3280_v32, %v869_v48  ;;  %v902_v18 = vmul.f32 %v2680_v21, %v2770_v58  ;;  %v910_v57 = vmul.f32 %v875_v11, %v2624_v39 }
 0x226   :  { %v1092_v27 = vmul.f32 %v1061_v19, %v2624_v39  ;;  %v1108_v44 = vmul.f32 %v1061_v19, %v2669_v33  ;;  %v885_v49 = vmul.f32 %v3281_v7, %v876_v15  ;;  %v926_v35 = vmul.f32 %v875_v11, %v2669_v33 }
 0x227   :  { %v911_v3 = vmul.f32 %v2806_v30, %v2624_v39  ;;  %v918_v62 = vadd.f32 %v910_v57, %v894_v6  ;;  %v912_v48 = vmul.f32 %v2781_v56, %v2624_v39  ;;  %v862_v52 = vmul.f32 %v2685_v47, %v2770_v58 }
 0x228   :  { %v1100_v1 = vadd.f32 %v1092_v27, %v1076_v25  ;;  %v1116_v54 = vadd.f32 %v1108_v44, %v1084_v4  ;;  %v909_v22 = vmul.f32 %v885_v49, %v2624_v39  ;;  %v925_v31 = vmul.f32 %v885_v49, %v2669_v33 }
 0x229   :  { %v934_v25 = vadd.f32 %v926_v35, %v902_v18  ;;  %v919_v4 = vadd.f32 %v911_v3, %v2766_v51  ;;  %v946_v30 = vmul.f32 %v2648_v14, %v918_v62  ;;  %v920_v11 = vadd.f32 %v912_v48, %v2775_v28 }
 0x22a   :  { %v1128_v45 = vmul.f32 %v2702_v63, %v1100_v1  ;;  %v917_v26 = vadd.f32 %v909_v22, %v893_v17  ;;  %v933_v50 = vadd.f32 %v925_v31, %v901_v38  ;;  %v1148_v19 = vmul.f32 %v2709_v23, %v1116_v54  ;;  %v3284_v54 = vld [vmem:[#allocation8_spill] sm:$0xff] }
 0x22b   :  { %v962_v32 = vrot.slane %v934_v25, 6  ;;  %v986_v56 = vmul.f32 %v934_v25, %v2633_v59  ;;  %v954_v6 = vadd.f32 %v946_v30, %v862_v52  ;;  %v994_v47 = vmul.f32 %v934_v25, %v2680_v21 }
 0x22c   :  { %v1136_v41 = vadd.f32 %v1128_v45, %v1044_v8  ;;  %v945_v15 = vmul.f32 %v2648_v14, %v917_v26  ;;  %v961_v27 = vrot.slane %v933_v50, 6  ;;  %v985_v51 = vmul.f32 %v933_v50, %v2633_v59 }
 0x22d   :  { %v947_v17 = vmul.f32 %v2648_v14, %v919_v4  ;;  %v948_v7 = vmul.f32 %v2648_v14, %v920_v11  ;;  %v3282_v8 = vrot.slane %v2904_v13, 6  ;;  %v993_v38 = vmul.f32 %v933_v50, %v2680_v21 }
 0x22e   :  { %v1156_v44 = vadd.f32 %v1148_v19, %v1136_v41  ;;  %v967_v28 = vsel %vm250_vm4, %v961_v27, %v962_v32  ;;  %v3283_v18 = vrot.slane %v2824_v24, 6  ;;  %v953_v22 = vadd.f32 %v945_v15, %v2830_v9 }
 0x22f   :  { %v968_v49 = vsel %vm250_vm4, %v3282_v8, %v961_v27  ;;  %v1002_v14 = vmul.f32 %v967_v28, %v2624_v39  ;;  %v1018_v3 = vmul.f32 %v967_v28, %v2669_v33  ;;  %v955_v13 = vadd.f32 %v947_v17, %v2755_v55 }
 0x230   :  { %v966_v57 = vsel %vm250_vm4, %v962_v32, %v3283_v18  ;;  %v1162_v1 = vpack.c.bf16 %v1156_v44, %v1155_v2  ;;  %v977_v35 = vmul.f32 %v3284_v54, %v968_v49  ;;  %v956_v62 = vadd.f32 %v948_v7, %v2762_v46 }
 0x231   :  { %v987_v31 = vmul.f32 %v2824_v24, %v2633_v59  ;;  %v1010_v48 = vadd.f32 %v1002_v14, %v986_v56  ;;  %v1026_v52 = vadd.f32 %v1018_v3, %v994_v47  ;;  %v988_v9 = vmul.f32 %v2818_v29, %v2633_v59 }
 0x232   :  { %1791 = vmatmul.mubr.msk.bf16.vlgmr.msra.gmra.mrb[8].mxu0 %vm469_vm6, %v1162_v1  ;;  %1803 = vmatmul.mubr.msk.bf16.vlgmr.msra.gmra.mrb[8].mxu1 %vm469_vm6, %v1162_v1  ;;  %v1001_v2 = vmul.f32 %v977_v35, %v2624_v39  ;;  %v1017_v45 = vmul.f32 %v977_v35, %v2669_v33  ;;  %v1003_v55 = vmul.f32 %v966_v57, %v2624_v39  ;;  %v3285_v14 = vrot.slane %v2874_v53, 4 }
 0x233   :  { %v1004_v46 = vmul.f32 %v2854_v0, %v2624_v39  ;;  %v1038_v26 = vmul.f32 %v2697_v40, %v1010_v48  ;;  %v1019_v50 = vmul.f32 %v966_v57, %v2669_v33  ;;  %v1054_v30 = vrot.slane %v1026_v52, 4 }
 0x234   :  { %v1009_v25 = vadd.f32 %v1001_v2, %v985_v51  ;;  %v1025_v4 = vadd.f32 %v1017_v45, %v993_v38  ;;  %v1078_v11 = vmul.f32 %v1026_v52, %v2633_v59  ;;  %v995_v41 = vmul.f32 %v2824_v24, %v2680_v21 }
 0x235   :  { %v1011_v19 = vadd.f32 %v1003_v55, %v987_v31  ;;  %v1046_v32 = vadd.f32 %v1038_v26, %v954_v6  ;;  %v1086_v15 = vmul.f32 %v1026_v52, %v2680_v21  ;;  %v1012_v27 = vadd.f32 %v1004_v46, %v988_v9 }
 0x236   :  { %v1037_v29 = vmul.f32 %v2697_v40, %v1009_v25  ;;  %v1053_v56 = vrot.slane %v1025_v4, 4  ;;  %v1077_v0 = vmul.f32 %v1025_v4, %v2633_v59  ;;  %v1027_v47 = vadd.f32 %v1019_v50, %v995_v41 }
 0x237   :  { %v1039_v44 = vmul.f32 %v2697_v40, %v1011_v19  ;;  %v1085_v6 = vmul.f32 %v1025_v4, %v2680_v21  ;;  %v1040_v49 = vmul.f32 %v2697_v40, %v1012_v27  ;;  %v1080_v5 = vmul.f32 %v2874_v53, %v2633_v59 }
 0x238   :  { %v1045_v51 = vadd.f32 %v1037_v29, %v953_v22  ;;  %v1059_v17 = vsel %vm343_vm5, %v1053_v56, %v1054_v30  ;;  %v1060_v24 = vsel %vm343_vm5, %v1052_v16, %v1053_v56  ;;  %v1055_v18 = vrot.slane %v1027_v47, 4 }
 0x239   :  { %v1069_v7 = vmul.f32 %v2368_v42, %v1060_v24  ;;  %v1094_v28 = vmul.f32 %v1059_v17, %v2624_v39  ;;  %v1110_v8 = vmul.f32 %v1059_v17, %v2669_v33  ;;  %v1047_v38 = vadd.f32 %v1039_v44, %v955_v13 }
 0x23a   :  { %v1079_v57 = vmul.f32 %v1027_v47, %v2633_v59  ;;  %v1048_v42 = vadd.f32 %v1040_v49, %v956_v62  ;;  %v1057_v3 = vsel %vm343_vm5, %v1055_v18, %v3285_v14  ;;  %v1058_v40 = vsel %vm343_vm5, %v1054_v30, %v1055_v18 }
 0x23b   :  { %v1093_v1 = vmul.f32 %v1069_v7, %v2624_v39  ;;  %v1102_v16 = vadd.f32 %v1094_v28, %v1078_v11  ;;  %v1109_v54 = vmul.f32 %v1069_v7, %v2669_v33  ;;  %v1118_v35 = vadd.f32 %v1110_v8, %v1086_v15 }
 0x23c   :  { %v1087_v22 = vmul.f32 %v1027_v47, %v2680_v21  ;;  %v1088_v2 = vmul.f32 %v2874_v53, %v2680_v21  ;;  %v1095_v48 = vmul.f32 %v1058_v40, %v2624_v39  ;;  %v1096_v62 = vmul.f32 %v1057_v3, %v2624_v39 }
 0x23d   :  { %v1101_v13 = vadd.f32 %v1093_v1, %v1077_v0  ;;  %v1117_v31 = vadd.f32 %v1109_v54, %v1085_v6  ;;  %v1130_v59 = vmul.f32 %v2702_v63, %v1102_v16  ;;  %v1111_v45 = vmul.f32 %v1058_v40, %v2669_v33 }
 0x23e   :  { %v1112_v52 = vmul.f32 %v1057_v3, %v2669_v33  ;;  %v1150_v55 = vmul.f32 %v2709_v23, %v1118_v35  ;;  %v1103_v46 = vadd.f32 %v1095_v48, %v1079_v57  ;;  %v1104_v25 = vadd.f32 %v1096_v62, %v1080_v5 }
 0x23f   :  { %v1129_v10 = vmul.f32 %v2702_v63, %v1101_v13  ;;  %v1138_v9 = vadd.f32 %v1130_v59, %v1046_v32  ;;  %v1119_v4 = vadd.f32 %v1111_v45, %v1087_v22  ;;  %v1149_v21 = vmul.f32 %v2709_v23, %v1117_v31  ;;  %v3081_v22 = vld [vmem:[%s3236_s3 + $0x70] ss:$0 sm:$0xff] }
 0x240   :  { %v1120_v26 = vadd.f32 %v1112_v52, %v1088_v2  ;;  %v1131_v30 = vmul.f32 %v2702_v63, %v1103_v46  ;;  %v1132_v39 = vmul.f32 %v2702_v63, %v1104_v25  ;;  %v1714_v63 = vld [vmem:[%s3236_s3 + $0x98] ss:$0 sm:$0xff] }
 0x241   :  { %v1137_v50 = vadd.f32 %v1129_v10, %v1045_v51  ;;  %v1158_v53 = vadd.f32 %v1150_v55, %v1138_v9  ;;  %v1151_v19 = vmul.f32 %v2709_v23, %v1119_v4 }
 0x242   :  { %v1139_v41 = vadd.f32 %v1131_v30, %v1047_v38  ;;  %v1140_v33 = vadd.f32 %v1132_v39, %v1048_v42  ;;  %v1152_v29 = vmul.f32 %v2709_v23, %v1120_v26 }
 0x243   :  { %v1157_v11 = vadd.f32 %v1149_v21, %v1137_v50 }
 0x244   :  { %v1159_v56 = vadd.f32 %v1151_v19, %v1139_v41  ;;  %v1160_v15 = vadd.f32 %v1152_v29, %v1140_v33 }
 0x245   :  { %v1163_v32 = vpack.c.bf16 %v1158_v53, %v1157_v11 }
 0x246   :  { %v1164_v0 = vpack.c.bf16 %v1160_v15, %v1159_v56 }
 0x247   :  { %1794 = vmatprep.mubr.msk.bf16.mxu0 %vm469_vm6, %v1163_v32  ;;  %1806 = vmatprep.mubr.msk.bf16.mxu1 %vm469_vm6, %v1163_v32 }
 0x248   :  { %1795 = vmatmul.mubr.msk.bf16.gmra.mrb[12].mxu0 %vm469_vm6, %v1164_v0  ;;  %1807 = vmatmul.mubr.msk.bf16.gmra.mrb[12].mxu1 %vm469_vm6, %v1164_v0 }
 0x249   :  { %1818 = vmatprep.mubr.msk.bf16.mxu0 %vm1955_vm10, %v3265_v61  ;;  %1826 = vmatprep.mubr.msk.bf16.mxu1 %vm1955_vm10, %v3265_v61 }
 0x305   :  { %v1792_v27 = vpop.f32.mrb[8].mxu0  ;;  %v1804_v47 = vpop.f32.mrb[8].mxu1 }
 0x306   :  { %v1309_v44 = vadd.f32 %v1804_v47, %v1714_v63  ;;  %v1229_v23 = vpop.f32.mrb[9].mxu0  ;;  %v1300_v51 = vpop.f32.mrb[9].mxu1  ;;  %v1238_v10 = vadd.f32 %v1792_v27, %v3081_v22 }
 0x307   :  { %v1301_v17 = vadd.f32 %v1714_v63, %v1300_v51  ;;  %v1793_v24 = vpop.f32.mrb[10].mxu0  ;;  %v1805_v6 = vpop.f32.mrb[10].mxu1  ;;  %v1230_v26 = vadd.f32 %v3081_v22, %v1229_v23 }
 0x308   :  { %v1721_v7 = vmul.f32 -1.442695, %v1309_v44  ;;  %v1312_v28 = vadd.f32 %v1805_v6, %v1714_v63  ;;  %v1232_v8 = vpop.f32.mrb[11].mxu0  ;;  %v1303_v49 = vpop.f32.mrb[11].mxu1  ;;  %v1241_v30 = vadd.f32 %v1793_v24, %v3081_v22 }
 0x309   :  { %v1719_v38 = vmul.f32 -1.442695, %v1301_v17  ;;  %v1304_v18 = vadd.f32 %v1714_v63, %v1303_v49  ;;  %v1233_v33 = vadd.f32 %v3081_v22, %v1232_v8 }
 0x30a   :  { %1881 = vpow2.f32 %v1721_v7  ;;  %v1722_v57 = vmul.f32 -1.442695, %v1312_v28 }
 0x30b   :  { %1883 = vpow2.f32 %v1719_v38  ;;  %v1720_v5 = vmul.f32 -1.442695, %v1304_v18 }
 0x30c   :  { %1885 = vpow2.f32 %v1722_v57 }
 0x30d   :  { %1887 = vpow2.f32 %v1720_v5 }
 0x314   :  { %v1882_v1 = vpop.eup %1881 }
 0x315   :  { %v1884_v16 = vpop.eup %1883  ;;  %v1357_v54 = vadd.f32 1.0, %v1882_v1 }
 0x316   :  { %v1886_v35 = vpop.eup %1885  ;;  %v1355_v42 = vadd.f32 1.0, %v1884_v16 }
 0x317   :  { %v1888_v14 = vpop.eup %1887  ;;  %1889 = vrcp.f32 %v1357_v54  ;;  %v1358_v3 = vadd.f32 1.0, %v1886_v35 }
 0x318   :  { %1891 = vrcp.f32 %v1355_v42  ;;  %v1356_v40 = vadd.f32 1.0, %v1888_v14 }
 0x319   :  { %1893 = vrcp.f32 %v1358_v3 }
 0x31a   :  { %1895 = vrcp.f32 %v1356_v40 }
 0x31b   :  { %v3083_v13 = vpop.f32.mrb[12].mxu0  ;;  %v1808_v31 = vpop.f32.mrb[12].mxu1 }
 0x31c   :  { %v1325_v59 = vadd.f32 %v1808_v31, %v1714_v63  ;;  %v3085_v2 = vpop.f32.mrb[13].mxu0  ;;  %v1316_v48 = vpop.f32.mrb[13].mxu1  ;;  %v1254_v54 = vadd.f32 %v3083_v13, %v3081_v22 }
 0x31d   :  { %v1317_v62 = vadd.f32 %v1714_v63, %v1316_v48  ;;  %v3087_v45 = vpop.f32.mrb[14].mxu0  ;;  %v1809_v52 = vpop.f32.mrb[14].mxu1  ;;  %v1246_v42 = vadd.f32 %v3081_v22, %v3085_v2 }
 0x31e   :  { %v1725_v9 = vmul.f32 -1.442695, %v1325_v59  ;;  %v1328_v55 = vadd.f32 %v1809_v52, %v1714_v63  ;;  %v3090_v46 = vpop.f32.mrb[15].mxu0  ;;  %v1319_v25 = vpop.f32.mrb[15].mxu1  ;;  %v1257_v3 = vadd.f32 %v3087_v45, %v3081_v22 }
 0x31f   :  { %v1723_v50 = vmul.f32 -1.442695, %v1317_v62  ;;  %v1320_v21 = vadd.f32 %v1714_v63, %v1319_v25  ;;  %v1249_v59 = vadd.f32 %v3081_v22, %v3090_v46 }
 0x320   :  { %1897 = vpow2.f32 %v1725_v9  ;;  %v1726_v39 = vmul.f32 -1.442695, %v1328_v55 }
 0x321   :  { %v1890_v4 = vpop.eup %1889  ;;  %1899 = vpow2.f32 %v1723_v50  ;;  %v1724_v19 = vmul.f32 -1.442695, %v1320_v21 }
 0x322   :  { %v1892_v53 = vpop.eup %1891  ;;  %v1381_v11 = vmul.f32 %v1890_v4, %v1238_v10  ;;  %1901 = vpow2.f32 %v1726_v39  ;;  %v1599_v39 = vld [vmem:[%s3237_s4 + $0x10] sm:$0xff] }
 0x323   :  { %v1894_v41 = vpop.eup %1893  ;;  %v1379_v29 = vmul.f32 %v1892_v53, %v1230_v26  ;;  %1903 = vpow2.f32 %v1724_v19  ;;  %v1597_v53 = vld [vmem:[%s3237_s4] sm:$0xff] }
 0x324   :  { %v1896_v32 = vpop.eup %1895  ;;  %v3096_v56 = vadd.f32 %v1381_v11, %v2750_v37  ;;  %v1382_v15 = vmul.f32 %v1894_v41, %v1241_v30  ;;  %v1598_v30 = vld [vmem:[%s3237_s4 + $0x8] sm:$0xff]  ;;  %v1600_v41 = vld [vmem:[%s3237_s4 + $0x18] sm:$0xff] }
 0x325   :  { %v1380_v0 = vmul.f32 %v1896_v32, %v1233_v33  ;;  %v3104_v47 = vadd.f32 %v1379_v29, %v2607_v60  ;;  %v1603_v11 = vpack.c.bf16 %v1598_v30, %v1597_v53  ;;  %v1604_v33 = vpack.c.bf16 %v1600_v41, %v1599_v39 }
 0x326   :  { %v1401_v63 = vsel %vm469_vm6, %v3096_v56, 0.0  ;;  %v3101_v27 = vadd.f32 %v1382_v15, %v2814_v36  ;;  %v1429_v51 = vmul.f32 %v3096_v56, %v3096_v56 }
 0x327   :  { %1402 = vadd.xlane.f32.xlu0 %v1401_v63  ;;  %v3109_v23 = vadd.f32 %v1380_v0, %v2611_v34  ;;  %v1395_v37 = vsel %vm469_vm6, %v3104_v47, 0.0  ;;  %v1427_v8 = vmul.f32 %v3104_v47, %v3104_v47  ;;  %1823 = vmatpush3.bf16.msra.mxu1 %v1603_v11 }
 0x328   :  { %v1404_v44 = vsel %vm469_vm6, %v3101_v27, 0.0  ;;  %v1430_v17 = vmul.f32 %v3101_v27, %v3101_v27  ;;  %v1441_v28 = vsel %vm469_vm6, %v1429_v51, 0.0  ;;  %1824 = vmatprep.subr.bf16.mxu1 %v3265_v61 }
 0x329   :  { %1405 = vadd.xlane.f32.xlu1 %v1404_v44  ;;  %v1398_v60 = vsel %vm469_vm6, %v3109_v23, 0.0  ;;  %v1428_v5 = vmul.f32 %v3109_v23, %v3109_v23  ;;  %v1435_v1 = vsel %vm469_vm6, %v1427_v8, 0.0 }
 0x32a   :  { %v1898_v36 = vpop.eup %1897  ;;  %v1444_v57 = vsel %vm469_vm6, %v1430_v17, 0.0 }
 0x32b   :  { %1396 = vadd.xlane.f32.xlu0 %v1395_v37  ;;  %v1900_v24 = vpop.eup %1899  ;;  %v1361_v6 = vadd.f32 1.0, %v1898_v36  ;;  %v1438_v16 = vsel %vm469_vm6, %v1428_v5, 0.0  ;;  %1825 = vmatpush3.bf16.msra.mxu1 %v1604_v33 }
 0x32c   :  { %v1902_v34 = vpop.eup %1901  ;;  %v1359_v7 = vadd.f32 1.0, %v1900_v24 }
 0x32d   :  { %1399 = vadd.xlane.f32.xlu1 %v1398_v60  ;;  %v1904_v49 = vpop.eup %1903  ;;  %1905 = vrcp.f32 %v1361_v6  ;;  %v1362_v38 = vadd.f32 1.0, %v1902_v34 }
 0x32e   :  { %1907 = vrcp.f32 %v1359_v7  ;;  %v1360_v18 = vadd.f32 1.0, %v1904_v49 }
 0x32f   :  { %1442 = vadd.xlane.f32.xlu0 %v1441_v28  ;;  %1909 = vrcp.f32 %v1362_v38 }
 0x330   :  { %1911 = vrcp.f32 %v1360_v18 }
 0x331   :  { %1445 = vadd.xlane.f32.xlu1 %v1444_v57 }
 0x333   :  { %1436 = vadd.xlane.f32.xlu0 %v1435_v1 }
 0x335   :  { %1439 = vadd.xlane.f32.xlu1 %v1438_v16 }
 0x337   :  { %v1906_v35 = vpop.eup %1905 }
 0x338   :  { %v1908_v14 = vpop.eup %1907  ;;  %v1385_v40 = vmul.f32 %v1906_v35, %v1254_v54 }
 0x339   :  { %v1910_v31 = vpop.eup %1909  ;;  %v1383_v48 = vmul.f32 %v1908_v14, %v1246_v42 }
 0x33a   :  { %v1912_v62 = vpop.eup %1911  ;;  %v3136_v52 = vadd.f32 %v1385_v40, %v2714_v20  ;;  %v1386_v10 = vmul.f32 %v1910_v31, %v1257_v3 }
 0x33b   :  { %v1384_v13 = vmul.f32 %v1912_v62, %v1249_v59  ;;  %v3144_v45 = vadd.f32 %v1383_v48, %v2789_v43 }
 0x33c   :  { %v1413_v9 = vsel %vm469_vm6, %v3136_v52, 0.0  ;;  %v3141_v2 = vadd.f32 %v1386_v10, %v2733_v12 }
 0x33d   :  { %1414 = vadd.xlane.f32.xlu0 %v1413_v9  ;;  %v3149_v55 = vadd.f32 %v1384_v13, %v2770_v58  ;;  %v1407_v20 = vsel %vm469_vm6, %v3144_v45, 0.0  ;;  %v1431_v46 = vmul.f32 %v3144_v45, %v3144_v45  ;;  %v1433_v58 = vmul.f32 %v3136_v52, %v3136_v52 }
 0x33e   :  { %v1416_v22 = vsel %vm469_vm6, %v3141_v2, 0.0  ;;  %v1434_v26 = vmul.f32 %v3141_v2, %v3141_v2 }
 0x33f   :  { %1417 = vadd.xlane.f32.xlu1 %v1416_v22  ;;  %v1410_v12 = vsel %vm469_vm6, %v3149_v55, 0.0  ;;  %v1432_v43 = vmul.f32 %v3149_v55, %v3149_v55  ;;  %v1447_v25 = vsel %vm469_vm6, %v1431_v46, 0.0  ;;  %v1453_v50 = vsel %vm469_vm6, %v1433_v58, 0.0  ;;  %v3287_v58 = vld [vmem:[#allocation9_spill] sm:$0xff] }
 0x340   :  { %v1456_v21 = vsel %vm469_vm6, %v1434_v26, 0.0 }
 0x341   :  { %1408 = vadd.xlane.f32.xlu0 %v1407_v20  ;;  %v1450_v4 = vsel %vm469_vm6, %v1432_v43, 0.0 }
 0x343   :  { %1411 = vadd.xlane.f32.xlu1 %v1410_v12 }
 0x345   :  { %1448 = vadd.xlane.f32.xlu0 %v1447_v25  ;;  %v3286_v25 = vld [vmem:[#allocation5_spill] sm:$0xff] }
 0x347   :  { %1451 = vadd.xlane.f32.xlu1 %v1450_v4  ;;  %v3188_v4 = vrot.slane %v3287_v58, %v3286_v25 }
 0x349   :  { %1454 = vadd.xlane.f32.xlu0 %v1453_v50 }
 0x34b   :  { %1457 = vadd.xlane.f32.xlu1 %v1456_v21 }
 0x3b4   :  { %v1403_v19 = vpop.xlane.xlu0 %1402 }
 0x3b5   :  { %v1421_v15 = vmul.f32 0.03125, %v1403_v19 }
 0x3b6   :  { %v1406_v29 = vpop.xlane.xlu1 %1405 }
 0x3b7   :  { %v1422_v63 = vmul.f32 0.03125, %v1406_v29  ;;  %v1469_v37 = vmul.f32 %v1421_v15, %v1421_v15  ;;  %v1493_v26 = vsub.f32 %v3096_v56, %v1421_v15 }
 0x3b8   :  { %v1397_v32 = vpop.xlane.xlu0 %1396 }
 0x3b9   :  { %v1419_v51 = vmul.f32 0.03125, %v1397_v32  ;;  %v1470_v17 = vmul.f32 %v1422_v63, %v1422_v63  ;;  %v1494_v22 = vsub.f32 %v3101_v27, %v1422_v63 }
 0x3ba   :  { %v1400_v0 = vpop.xlane.xlu1 %1399 }
 0x3bb   :  { %v1420_v24 = vmul.f32 0.03125, %v1400_v0  ;;  %v1467_v28 = vmul.f32 %v1419_v51, %v1419_v51  ;;  %v1491_v20 = vsub.f32 %v3104_v47, %v1419_v51 }
 0x3bc   :  { %v1443_v44 = vpop.xlane.xlu0 %1442 }
 0x3bd   :  { %v1461_v36 = vmul.f32 0.03125, %v1443_v44  ;;  %v1468_v57 = vmul.f32 %v1420_v24, %v1420_v24  ;;  %v1492_v50 = vsub.f32 %v3109_v23, %v1420_v24  ;;  %v1929_v44 = vld [vmem:[%s3235_s2 + $0x18] sm:$0x7] }
 0x3be   :  { %v1446_v60 = vpop.xlane.xlu1 %1445 }
 0x3bf   :  { %v1477_v6 = vsub.f32 %v1461_v36, %v1469_v37  ;;  %v1462_v34 = vmul.f32 0.03125, %v1446_v60  ;;  %v3288_v37 = vld [vmem:[#allocation6_spill] sm:$0xff] }
 0x3c0   :  { %v1437_v7 = vpop.xlane.xlu0 %1436  ;;  %v1538_v51 = vrot.slane %v1929_v44, %v3288_v37 }
 0x3c1   :  { %v1485_v8 = vmax.f32 %v1477_v6, 0.0  ;;  %v1478_v49 = vsub.f32 %v1462_v34, %v1470_v17  ;;  %v1459_v38 = vmul.f32 0.03125, %v1437_v7 }
 0x3c2   :  { %v1440_v18 = vpop.xlane.xlu1 %1439 }
 0x3c3   :  { %v1486_v5 = vmax.f32 %v1478_v49, 0.0  ;;  %v1475_v1 = vsub.f32 %v1459_v38, %v1467_v28  ;;  %v1460_v16 = vmul.f32 0.03125, %v1440_v18  ;;  %v1501_v54 = vadd.f32 1e-05, %v1485_v8 }
 0x3c5   :  { %v1502_v35 = vadd.f32 1e-05, %v1486_v5  ;;  %v1483_v42 = vmax.f32 %v1475_v1, 0.0  ;;  %v1476_v14 = vsub.f32 %v1460_v16, %v1468_v57 }
 0x3c7   :  { %1913 = vrsqrt.f32 %v1502_v35  ;;  %v1499_v3 = vadd.f32 1e-05, %v1483_v42  ;;  %v1484_v40 = vmax.f32 %v1476_v14, 0.0 }
 0x3c8   :  { %1915 = vrsqrt.f32 %v1501_v54 }
 0x3c9   :  { %1917 = vrsqrt.f32 %v1499_v3  ;;  %v1500_v31 = vadd.f32 1e-05, %v1484_v40 }
 0x3ca   :  { %v1415_v59 = vpop.xlane.xlu0 %1414 }
 0x3cb   :  { %1919 = vrsqrt.f32 %v1500_v31  ;;  %v1425_v11 = vmul.f32 0.03125, %v1415_v59 }
 0x3cc   :  { %v1418_v48 = vpop.xlane.xlu1 %1417 }
 0x3cd   :  { %v1426_v41 = vmul.f32 0.03125, %v1418_v48  ;;  %v1473_v60 = vmul.f32 %v1425_v11, %v1425_v11 }
 0x3ce   :  { %v1409_v62 = vpop.xlane.xlu0 %1408 }
 0x3cf   :  { %v3182_v13 = vmul.f32 0.03125, %v1409_v62  ;;  %v1474_v34 = vmul.f32 %v1426_v41, %v1426_v41  ;;  %v1498_v58 = vsub.f32 %v3141_v2, %v1426_v41 }
 0x3d0   :  { %v1412_v46 = vpop.xlane.xlu1 %1411 }
 0x3d1   :  { %v1914_v10 = vpop.eup %1913  ;;  %v1424_v43 = vmul.f32 0.03125, %v1412_v46  ;;  %v1471_v27 = vmul.f32 %v3182_v13, %v3182_v13  ;;  %v1495_v48 = vsub.f32 %v3144_v45, %v3182_v13 }
 0x3d2   :  { %v1916_v9 = vpop.eup %1915  ;;  %v1449_v21 = vpop.xlane.xlu0 %1448  ;;  %v1518_v30 = vmul.f32 %v1914_v10, %v1494_v22 }
 0x3d3   :  { %v1918_v12 = vpop.eup %1917  ;;  %v1463_v47 = vmul.f32 0.03125, %v1449_v21  ;;  %v1517_v32 = vmul.f32 %v1916_v9, %v1493_v26  ;;  %v1472_v0 = vmul.f32 %v1424_v43, %v1424_v43  ;;  %v1496_v10 = vsub.f32 %v3149_v55, %v1424_v43 }
 0x3d4   :  { %v1515_v53 = vmul.f32 %v1918_v12, %v1491_v20  ;;  %v1452_v33 = vpop.xlane.xlu1 %1451  ;;  %v1530_v36 = vmul.f32 %v3188_v4, %v1518_v30  ;;  %v1497_v20 = vsub.f32 %v3136_v52, %v1425_v11  ;;  %v1547_v11 = vld [vmem:[%s3234_s1] sm:$0x3]  ;;  %s1660_s1 = sshll.u32 %s1956_s17, 4  ;;  %s1661_s1 = int_to_ptr.vmem [resolvable:$true] %s1660_s1 }
 0x3d5   :  { %v1920_v39 = vpop.eup %1919  ;;  %v1479_v63 = vsub.f32 %v1463_v47, %v1471_v27  ;;  %v1464_v56 = vmul.f32 0.03125, %v1452_v33  ;;  %v1529_v49 = vmul.f32 %v3188_v4, %v1517_v32  ;;  %v1548_v27 = vpack.c.bf16 %v1547_v11, %v1547_v11  ;;  %s1930_s18 = scalar_lea.vmem %s1661_s1, 32  ;;  %p1935_p1 = scmp.lt.s32.totalorder %s1661_s1, %s1661_s1 }
 0x3d6   :  { %v1516_v19 = vmul.f32 %v1920_v39, %v1492_v50  ;;  %v1527_v29 = vmul.f32 %v3188_v4, %v1515_v53  ;;  %v1455_v15 = vpop.xlane.xlu0 %1454  ;;  %v1542_v16 = vadd.f32 %v1538_v51, %v1530_v36  ;;  %p1931_p0 = scmp.ne.s32.totalorder %s1661_s1, %s1930_s18  ;;  %p1936_p2 = scmp.lt.s32.totalorder %s1930_s18, %s1930_s18 }
 0x3d7   :  { %v1487_v17 = vmax.f32 %v1479_v63, 0.0  ;;  %v1480_v24 = vsub.f32 %v1464_v56, %v1472_v0  ;;  %v1465_v6 = vmul.f32 0.03125, %v1455_v15  ;;  %v1541_v14 = vadd.f32 %v1538_v51, %v1529_v49 }
 0x3d8   :  { %v1528_v23 = vmul.f32 %v3188_v4, %v1516_v19  ;;  %v1458_v7 = vpop.xlane.xlu1 %1457  ;;  %v1539_v28 = vadd.f32 %v1538_v51, %v1527_v29  ;;  %p1937_p3 = por %p1936_p2, %p1935_p1 }
 0x3d9   :  { %v1503_v38 = vadd.f32 1e-05, %v1487_v17  ;;  %v1488_v18 = vmax.f32 %v1480_v24, 0.0  ;;  %v1481_v57 = vsub.f32 %v1465_v6, %v1473_v60  ;;  %v1466_v5 = vmul.f32 0.03125, %v1458_v7 }
 0x3da   :  { %v1540_v8 = vadd.f32 %v1538_v51, %v1528_v23  ;;  %v1550_v31 = vpack.c.bf16 %v1542_v16, %v1541_v14  ;;  %p1938_p4 = pnand %p1937_p3, %p1931_p0 }
 0x3db   :  { %1921 = vrsqrt.f32 %v1503_v38  ;;  %v1504_v54 = vadd.f32 1e-05, %v1488_v18  ;;  %v1489_v35 = vmax.f32 %v1481_v57, 0.0  ;;  %v1482_v42 = vsub.f32 %v1466_v5, %v1474_v34 }
 0x3dc   :  { %v1549_v1 = vpack.c.bf16 %v1540_v8, %v1539_v28 }
 0x3dd   :  { %1923 = vrsqrt.f32 %v1504_v54  ;;  %v1505_v3 = vadd.f32 1e-05, %v1489_v35  ;;  %v1490_v40 = vmax.f32 %v1482_v42, 0.0 }
 0x3de   :  { %1811 = vmatpush3.bf16.msra.mxu0 %v1549_v1 }
 0x3df   :  { %1812 = vmatprep.subr.bf16.mxu0 %v3265_v61  ;;  %1925 = vrsqrt.f32 %v1505_v3  ;;  %v1506_v59 = vadd.f32 1e-05, %v1490_v40 }
 0x3e1   :  { %1927 = vrsqrt.f32 %v1506_v59 }
 0x3e2   :  { %1813 = vmatpush3.bf16.msra.mxu0 %v1550_v31 }
 0x3e3   :  { %1814 = vmatprep.subr.bf16.mxu0 %v3265_v61 }
 0x3e5   :  { %v1922_v62 = vpop.eup %1921 }
 0x3e6   :  { %v1519_v9 = vmul.f32 %v1922_v62, %v1495_v48 }
 0x3e7   :  { %v1924_v22 = vpop.eup %1923 }
 0x3e8   :  { %v1520_v46 = vmul.f32 %v1924_v22, %v1496_v10  ;;  %v1531_v12 = vmul.f32 %v3188_v4, %v1519_v9 }
 0x3e9   :  { %v1926_v25 = vpop.eup %1925 }
 0x3ea   :  { %v1532_v26 = vmul.f32 %v3188_v4, %v1520_v46  ;;  %v1521_v50 = vmul.f32 %v1926_v25, %v1497_v20  ;;  %v1543_v53 = vadd.f32 %v1538_v51, %v1531_v12 }
 0x3eb   :  { %v1928_v21 = vpop.eup %1927 }
 0x3ec   :  { %v1544_v30 = vadd.f32 %v1538_v51, %v1532_v26  ;;  %v1522_v45 = vmul.f32 %v1928_v21, %v1498_v58  ;;  %v1533_v13 = vmul.f32 %v3188_v4, %v1521_v50 }
 0x3ee   :  { %v1551_v55 = vpack.c.bf16 %v1544_v30, %v1543_v53  ;;  %v1534_v43 = vmul.f32 %v3188_v4, %v1522_v45  ;;  %v1545_v52 = vadd.f32 %v1538_v51, %v1533_v13  ;;  %v1728_v4 = vld [vmem:[%s3237_s4 + $0x20] ss:$0 sm:$0xff] }
 0x3f0   :  { %1815 = vmatpush3.bf16.msra.mxu0 %v1551_v55  ;;  %v1546_v39 = vadd.f32 %v1538_v51, %v1534_v43 }
 0x3f1   :  { %1816 = vmatprep.subr.bf16.mxu0 %v3265_v61 }
 0x3f2   :  { %v1552_v2 = vpack.c.bf16 %v1546_v39, %v1545_v52 }
 0x3f4   :  { %1817 = vmatpush3.bf16.msra.mxu0 %v1552_v2 }
 0x3f7   :  { %1819 = vmatmul.mubr.msk.bf16.vlgmr.msra.gmra.mrb[16].mxu0 %vm1553_vm11, %v1548_v27 }
 0x4ca   :  { %v1591_v47 = vpop.f32.mrb[16].mxu0 }
 0x4cb   :  { %v1602_v41 = vpack.c.bf16 %v1591_v47, %v1591_v47  ;;  %v1820_v33 = vpop.f32.mrb[17].mxu0 }
 0x4cc   :  { %v1594_v19 = vpop.f32.mrb[18].mxu0 }
 0x4cd   :  { %v1821_v29 = vpop.f32.mrb[19].mxu0  ;;  %1827 = vmatmul.mubr.msk.bf16.vlgmr.msra.gmra.mrb[16].mxu1 %vm469_vm6, %v1602_v41 }
 0x5a0   :  { %v1646_v32 = vpop.f32.mrb[16].mxu1 }
 0x5a1   :  { %v1647_v61 = vadd.f32 %v1728_v4, %v1646_v32  ;;  %v1828_v0 = vpop.f32.mrb[17].mxu1 }
 0x5a2   :  { %v1649_v63 = vpop.f32.mrb[18].mxu1 }
 0x5a3   :  { %v1829_v56 = vpop.f32.mrb[19].mxu1  ;;  %1653 = vst.msk [vmem:[#allocation2] sm:$0x3] %vm1652_vm12, %v1647_v61 }
 0x5a4   :  { %1941 = shalt.err (!%p1938_p4)
}
 0x5a5   :  { %s1942_s4 = scalar_lea.hbm %s3238_s5, 32 }
 0x5a6   :  { %p1943_p5 = scmp.ne.s32.totalorder %s3238_s5, %s1942_s4  ;;  %p1946_p6 = scmp.lt.u32.totalorder %s1942_s4, %s3238_s5 }
 0x5a8   :  { %p1948_p7 = pnand %p1946_p6, %p1943_p5 }
 0x5aa   :  { %1951 = shalt.err (!%p1948_p7)
}
 0x5ab   :  { %1663 = dma.vmem_to_hbm [thread:$0]  %s1661_s1, 32, %s3238_s5, [#allocation3]  }
 0x5ac   :  { %1952 = dma.done.wait [#allocation3], 32  }
 0x5ad   :  { %1953 = vsyncadd [#allocation3], 4294967264 }
 0x5ae   :  { %1667 = vsyncpa [#allocation3], 1 }

</bundles_post_ra>
